<compile_context>
chip_gen: v5e
topology: v5e:2x2
jax: 0.10.0
libtpu: 0.0.40
codegen_flags: <defaults>
</compile_context>

<pallas_src>
import jax
import jax.numpy as jnp
from jax import lax
from jax.experimental import pallas as pl
from jax.experimental.pallas import tpu as pltpu

EPS = 1e-3  # module: BatchNorm2d(112, eps=0.001)


def prepare_params(weight, gamma, beta):
    """One-time parameter repacking (outside the jitted hot path)."""
    c_out, c_in = weight.shape[0], weight.shape[1]
    w2d = weight.reshape(c_out, c_in)          # (112, 512), 1x1 conv weight
    gb = jnp.stack([gamma, beta], axis=1)      # (112, 2): one small operand
    return w2d, gb


def cat_conv_bn(x108, x114, x120, x124, w2d, gb):
    """x*: NCHW float32; w2d: (112, 512); gb: (112, 2) = [gamma | beta]."""
    N, c1, H, W = x108.shape
    c2 = x114.shape[1]
    c3 = x120.shape[1]
    c4 = x124.shape[1]
    c12 = c1 + c2
    c123 = c12 + c3
    c_in = c123 + c4
    c_out = w2d.shape[0]
    cols = N * H * W
    inv_n = 1.0 / cols

    def to_cols(x):
        c = x.shape[1]
        if N == 1:
            # (1, C, H, W) -> (C, H*W): pure reshape, no data movement.
            return x.reshape(c, cols)
        # General-N fallback (not hit by the spec's shapes).
        return jnp.transpose(x, (1, 0, 2, 3)).reshape(c, cols)

    x1 = to_cols(x108)   # (128, 196)
    x2 = to_cols(x114)   # (256, 196)
    x3 = to_cols(x120)   # ( 64, 196)
    x4 = to_cols(x124)   # ( 64, 196)

    def kernel(x1_ref, x2_ref, x3_ref, x4_ref, w_ref, gb_ref, o_ref):
        # 1x1 conv over the channel-concat, in (C_out, N*H*W) layout:
        #   y = W[:, :c1] @ x1 + W[:, c1:c12] @ x2
        #       + W[:, c12:c123] @ x3 + W[:, c123:] @ x4
        # Accumulate straight into the output VMEM ref -> bounded liveness
        # (one ~28-vreg tensor at a time, no chained register partials).
        o_ref[...] = jnp.dot(w_ref[:, 0:c1], x1_ref[...],
                             preferred_element_type=jnp.float32)
        o_ref[...] += jnp.dot(w_ref[:, c1:c12], x2_ref[...],
                              preferred_element_type=jnp.float32)
        o_ref[...] += jnp.dot(w_ref[:, c12:c123], x3_ref[...],
                              preferred_element_type=jnp.float32)
        o_ref[...] += jnp.dot(w_ref[:, c123:c_in], x4_ref[...],
                              preferred_element_type=jnp.float32)

        # BatchNorm2d, training mode: per-output-channel (row) batch stats
        # over all N*H*W columns, biased variance, fused normalize+affine.
        y = o_ref[...]
        s1 = jnp.sum(y, axis=1, keepdims=True)
        s2 = jnp.sum(y * y, axis=1, keepdims=True)
        mean = s1 * inv_n
        var = s2 * inv_n - mean * mean
        scale = lax.rsqrt(var + EPS) * gb_ref[:, 0:1]       # gamma / std
        shift = gb_ref[:, 1:2] - mean * scale               # beta - mean*scale
        o_ref[...] = y * scale + shift

    cost = pl.CostEstimate(
        flops=2 * c_out * c_in * cols,                       # ~22.5 MFLOP
        transcendentals=c_out,                               # one rsqrt / chan
        bytes_accessed=4 * (c_in * cols + c_out * c_in
                            + 2 * c_out + c_out * cols),     # ~0.72 MB
    )

    vmem = pl.BlockSpec(memory_space=pltpu.MemorySpace.VMEM)
    out = pl.pallas_call(
        kernel,
        out_shape=jax.ShapeDtypeStruct((c_out, cols), jnp.float32),
        in_specs=[vmem] * 6,
        out_specs=vmem,
        cost_estimate=cost,
    )(x1, x2, x3, x4, w2d, gb)

    if N == 1:
        # (112, 196) -> (1, 112, 14, 14): pure reshape, no data movement.
        return out.reshape(1, c_out, H, W)
    return jnp.transpose(out.reshape(c_out, N, H, W), (1, 0, 2, 3))


def _reference(x108, x114, x120, x124, weight, gamma, beta):
    x = jnp.concatenate([x108, x114, x120, x124], axis=1)
    w = weight.reshape(weight.shape[0], weight.shape[1])      # (112, 512)
    y = jnp.einsum('nchw,oc->nohw', x, w)
    mean = jnp.mean(y, axis=(0, 2, 3), keepdims=True)
    var = jnp.mean((y - mean) ** 2, axis=(0, 2, 3), keepdims=True)
    y = (y - mean) / jnp.sqrt(var + EPS)
    return y * gamma.reshape(1, -1, 1, 1) + beta.reshape(1, -1, 1, 1)


if __name__ == "__main__":
    key = jax.random.PRNGKey(0)
    k1, k2, k3, k4, kw = jax.random.split(key, 5)

    # Shapes from the module's forward.
    x108 = jax.random.normal(k1, (1, 128, 14, 14), dtype=jnp.float32)
    x114 = jax.random.normal(k2, (1, 256, 14, 14), dtype=jnp.float32)
    x120 = jax.random.normal(k3, (1, 64, 14, 14), dtype=jnp.float32)
    x124 = jax.random.normal(k4, (1, 64, 14, 14), dtype=jnp.float32)

    # Deterministic parameter init (no checkpoint load).
    weight = jax.random.normal(kw, (112, 512, 1, 1), dtype=jnp.float32) * 0.05
    gamma = jnp.ones((112,), dtype=jnp.float32)   # PyTorch BN default affine
    beta = jnp.zeros((112,), dtype=jnp.float32)

    # One-time parameter repacking (outside the jitted hot path).
    w2d, gb = prepare_params(weight, gamma, beta)

    fn = jax.jit(cat_conv_bn)
    out = jax.block_until_ready(fn(x108, x114, x120, x124, w2d, gb))

    ref = _reference(x108, x114, x120, x124, weight, gamma, beta)
    assert out.shape == (1, 112, 14, 14)
    assert jnp.allclose(out, ref, atol=1e-3, rtol=1e-3)

    print("KERNEL_OK")
</pallas_src>

<mosaic_0001>
module attributes {stable_mosaic.version = 11 : i64} {
  func.func @kernel(%arg0: memref<128x196xf32, #tpu.memory_space<vmem>>, %arg1: memref<256x196xf32, #tpu.memory_space<vmem>>, %arg2: memref<64x196xf32, #tpu.memory_space<vmem>>, %arg3: memref<64x196xf32, #tpu.memory_space<vmem>>, %arg4: memref<112x512xf32, #tpu.memory_space<vmem>>, %arg5: memref<112x2xf32, #tpu.memory_space<vmem>>, %arg6: memref<112x196xf32, #tpu.memory_space<vmem>>) attributes {dimension_semantics = [], scalar_prefetch = 0 : i64, scratch_operands = 0 : i64, tpu.core_type = #tpu.core_type<tc>} {
    %c0 = arith.constant 0 : index
    %c0_0 = arith.constant 0 : index
    %0 = vector.load %arg4[%c0, %c0_0] : memref<112x512xf32, #tpu.memory_space<vmem>>, vector<112x128xf32>
    %c0_1 = arith.constant 0 : index
    %c0_2 = arith.constant 0 : index
    %1 = vector.load %arg0[%c0_1, %c0_2] : memref<128x196xf32, #tpu.memory_space<vmem>>, vector<128x196xf32>
    %cst = arith.constant dense<0.000000e+00> : vector<112x196xf32>
    %2 = tpu.matmul %0, %1, %cst {dimension_numbers = #tpu.dot_dimension_numbers<[1], [0], [0], [1], [0, 0, 1, 1], [], []>} : vector<112x128xf32>, vector<128x196xf32>, vector<112x196xf32> -> vector<112x196xf32>
    %c0_3 = arith.constant 0 : index
    %c0_4 = arith.constant 0 : index
    %3 = vector.load %arg6[%c0_3, %c0_4] : memref<112x196xf32, #tpu.memory_space<vmem>>, vector<112x196xf32>
    tpu.vector_store %arg6[%c0_3, %c0_4], %2 {strides = array<i32>} : memref<112x196xf32, #tpu.memory_space<vmem>>, vector<112x196xf32>,
    %c0_5 = arith.constant 0 : index
    %c0_6 = arith.constant 0 : index
    %4 = vector.load %arg6[%c0_5, %c0_6] : memref<112x196xf32, #tpu.memory_space<vmem>>, vector<112x196xf32>
    %c0_7 = arith.constant 0 : index
    %c128 = arith.constant 128 : index
    %5 = vector.load %arg4[%c0_7, %c128] : memref<112x512xf32, #tpu.memory_space<vmem>>, vector<112x256xf32>
    %c0_8 = arith.constant 0 : index
    %c0_9 = arith.constant 0 : index
    %6 = vector.load %arg1[%c0_8, %c0_9] : memref<256x196xf32, #tpu.memory_space<vmem>>, vector<256x196xf32>
    %cst_10 = arith.constant dense<0.000000e+00> : vector<112x196xf32>
    %7 = tpu.matmul %5, %6, %cst_10 {dimension_numbers = #tpu.dot_dimension_numbers<[1], [0], [0], [1], [0, 0, 1, 1], [], []>} : vector<112x256xf32>, vector<256x196xf32>, vector<112x196xf32> -> vector<112x196xf32>
    %8 = arith.addf %4, %7 : vector<112x196xf32>
    %c0_11 = arith.constant 0 : index
    %c0_12 = arith.constant 0 : index
    %9 = vector.load %arg6[%c0_11, %c0_12] : memref<112x196xf32, #tpu.memory_space<vmem>>, vector<112x196xf32>
    tpu.vector_store %arg6[%c0_11, %c0_12], %8 {strides = array<i32>} : memref<112x196xf32, #tpu.memory_space<vmem>>, vector<112x196xf32>,
    %c0_13 = arith.constant 0 : index
    %c0_14 = arith.constant 0 : index
    %10 = vector.load %arg6[%c0_13, %c0_14] : memref<112x196xf32, #tpu.memory_space<vmem>>, vector<112x196xf32>
    %c0_15 = arith.constant 0 : index
    %c384 = arith.constant 384 : index
    %11 = vector.load %arg4[%c0_15, %c384] : memref<112x512xf32, #tpu.memory_space<vmem>>, vector<112x64xf32>
    %c0_16 = arith.constant 0 : index
    %c0_17 = arith.constant 0 : index
    %12 = vector.load %arg2[%c0_16, %c0_17] : memref<64x196xf32, #tpu.memory_space<vmem>>, vector<64x196xf32>
    %cst_18 = arith.constant dense<0.000000e+00> : vector<112x196xf32>
    %13 = tpu.matmul %11, %12, %cst_18 {dimension_numbers = #tpu.dot_dimension_numbers<[1], [0], [0], [1], [0, 0, 1, 1], [], []>} : vector<112x64xf32>, vector<64x196xf32>, vector<112x196xf32> -> vector<112x196xf32>
    %14 = arith.addf %10, %13 : vector<112x196xf32>
    %c0_19 = arith.constant 0 : index
    %c0_20 = arith.constant 0 : index
    %15 = vector.load %arg6[%c0_19, %c0_20] : memref<112x196xf32, #tpu.memory_space<vmem>>, vector<112x196xf32>
    tpu.vector_store %arg6[%c0_19, %c0_20], %14 {strides = array<i32>} : memref<112x196xf32, #tpu.memory_space<vmem>>, vector<112x196xf32>,
    %c0_21 = arith.constant 0 : index
    %c0_22 = arith.constant 0 : index
    %16 = vector.load %arg6[%c0_21, %c0_22] : memref<112x196xf32, #tpu.memory_space<vmem>>, vector<112x196xf32>
    %c0_23 = arith.constant 0 : index
    %c448 = arith.constant 448 : index
    %17 = vector.load %arg4[%c0_23, %c448] : memref<112x512xf32, #tpu.memory_space<vmem>>, vector<112x64xf32>
    %c0_24 = arith.constant 0 : index
    %c0_25 = arith.constant 0 : index
    %18 = vector.load %arg3[%c0_24, %c0_25] : memref<64x196xf32, #tpu.memory_space<vmem>>, vector<64x196xf32>
    %cst_26 = arith.constant dense<0.000000e+00> : vector<112x196xf32>
    %19 = tpu.matmul %17, %18, %cst_26 {dimension_numbers = #tpu.dot_dimension_numbers<[1], [0], [0], [1], [0, 0, 1, 1], [], []>} : vector<112x64xf32>, vector<64x196xf32>, vector<112x196xf32> -> vector<112x196xf32>
    %20 = arith.addf %16, %19 : vector<112x196xf32>
    %c0_27 = arith.constant 0 : index
    %c0_28 = arith.constant 0 : index
    %21 = vector.load %arg6[%c0_27, %c0_28] : memref<112x196xf32, #tpu.memory_space<vmem>>, vector<112x196xf32>
    tpu.vector_store %arg6[%c0_27, %c0_28], %20 {strides = array<i32>} : memref<112x196xf32, #tpu.memory_space<vmem>>, vector<112x196xf32>,
    %c0_29 = arith.constant 0 : index
    %c0_30 = arith.constant 0 : index
    %22 = vector.load %arg6[%c0_29, %c0_30] : memref<112x196xf32, #tpu.memory_space<vmem>>, vector<112x196xf32>
    %cst_31 = arith.constant dense<0.000000e+00> : vector<112xf32>
    %23 = vector.multi_reduction <add>, %22, %cst_31 [1] : vector<112x196xf32> to vector<112xf32>
    %24 = vector.shape_cast %23 : vector<112xf32> to vector<112x1xf32>
    %25 = arith.mulf %22, %22 : vector<112x196xf32>
    %cst_32 = arith.constant dense<0.000000e+00> : vector<112xf32>
    %26 = vector.multi_reduction <add>, %25, %cst_32 [1] : vector<112x196xf32> to vector<112xf32>
    %27 = vector.shape_cast %26 : vector<112xf32> to vector<112x1xf32>
    %cst_33 = arith.constant 0.00510204071 : f32
    %28 = vector.broadcast %cst_33 : f32 to vector<112x1xf32>
    %29 = arith.mulf %24, %28 : vector<112x1xf32>
    %cst_34 = arith.constant 0.00510204071 : f32
    %30 = vector.broadcast %cst_34 : f32 to vector<112x1xf32>
    %31 = arith.mulf %27, %30 : vector<112x1xf32>
    %32 = arith.mulf %29, %29 : vector<112x1xf32>
    %33 = arith.subf %31, %32 : vector<112x1xf32>
    %cst_35 = arith.constant 1.000000e-03 : f32
    %34 = vector.broadcast %cst_35 : f32 to vector<112x1xf32>
    %35 = arith.addf %33, %34 : vector<112x1xf32>
    %36 = math.rsqrt %35 : vector<112x1xf32>
    %c0_36 = arith.constant 0 : index
    %c0_37 = arith.constant 0 : index
    %37 = vector.load %arg5[%c0_36, %c0_37] : memref<112x2xf32, #tpu.memory_space<vmem>>, vector<112x1xf32>
    %38 = arith.mulf %36, %37 : vector<112x1xf32>
    %c0_38 = arith.constant 0 : index
    %c1 = arith.constant 1 : index
    %39 = vector.load %arg5[%c0_38, %c1] : memref<112x2xf32, #tpu.memory_space<vmem>>, vector<112x1xf32>
    %40 = arith.mulf %29, %38 : vector<112x1xf32>
    %41 = arith.subf %39, %40 : vector<112x1xf32>
    %42 = vector.broadcast %38 : vector<112x1xf32> to vector<112x196xf32>
    %43 = arith.mulf %22, %42 : vector<112x196xf32>
    %44 = vector.broadcast %41 : vector<112x1xf32> to vector<112x196xf32>
    %45 = arith.addf %43, %44 : vector<112x196xf32>
    %c0_39 = arith.constant 0 : index
    %c0_40 = arith.constant 0 : index
    %46 = vector.load %arg6[%c0_39, %c0_40] : memref<112x196xf32, #tpu.memory_space<vmem>>, vector<112x196xf32>
    tpu.vector_store %arg6[%c0_39, %c0_40], %45 {strides = array<i32>} : memref<112x196xf32, #tpu.memory_space<vmem>>, vector<112x196xf32>,
    return
  }
}

</mosaic_0001>

<bundles_post_ra>
// kernel: cat_conv_bn.1
= control target key start
LH: loop header
LB: loop body
LE: loop exit
PB: predicated region body
PF: predicated region fallthrough
CT: control target
= control target key end

     0   :  { %s2060_s7 = smov 64   ;;  %vm188_vm0 = vcmask 556032   ;;  %vm686_vm1 = vcmask 523264   ;;  %s2062_s10 = smov 1   ;;  %s3744_s0 = inlined_call_operand.vmem [shape: f32[128,196], index: 0, kind: input, shape index: {}]   ;;  %s3745_s4 = inlined_call_operand.vmem [shape: f32[112,512], index: 4, kind: input, shape index: {}]   ;;  %s3746_s1 = inlined_call_operand.vmem [shape: f32[256,196], index: 1, kind: input, shape index: {}]   ;;  %s3747_s2 = inlined_call_operand.vmem [shape: f32[64,196], index: 2, kind: input, shape index: {}]   ;;  %s3748_s3 = inlined_call_operand.vmem [shape: f32[64,196], index: 3, kind: input, shape index: {}]   ;;  %s3749_s6 = inlined_call_operand.vmem [shape: f32[112,196], index: 6, kind: output, shape index: {}]   ;;  %s3750_s5 = inlined_call_operand.vmem [shape: f32[112,2], index: 5, kind: input, shape index: {}]  }
   0x1   :  { %v67_v0 = vld [vmem:[%s3744_s0 + $0xf0] sm:$0xff]  ;;  %v68_v1 = vld [vmem:[%s3744_s0 + $0xf8] sm:$0xff]  ;;  %v65_v2 = vld [vmem:[%s3744_s0 + $0xe0] sm:$0xff] }
   0x2   :  { %69 = vmatpush.msra.mxu0 %v67_v0  ;;  %1979 = vmatpush.msra.mxu2 %v67_v0  ;;  %v66_v3 = vld [vmem:[%s3744_s0 + $0xe8] sm:$0xff]  ;;  %v63_v4 = vld [vmem:[%s3744_s0 + $0xd0] sm:$0xff]  ;;  %v64_v5 = vld [vmem:[%s3744_s0 + $0xd8] sm:$0xff] }
   0x3   :  { %128 = vmatpush.msra.mxu1 %v68_v1  ;;  %1995 = vmatpush.msra.mxu3 %v68_v1  ;;  %v61_v6 = vld [vmem:[%s3744_s0 + $0xc0] sm:$0xff]  ;;  %v62_v7 = vld [vmem:[%s3744_s0 + $0xc8] sm:$0xff]  ;;  %v59_v8 = vld [vmem:[%s3744_s0 + $0xb0] sm:$0xff] }
   0x4   :  { %70 = vmatpush.msra.mxu0 %v65_v2  ;;  %1980 = vmatpush.msra.mxu2 %v65_v2  ;;  %v60_v9 = vld [vmem:[%s3744_s0 + $0xb8] sm:$0xff]  ;;  %v57_v10 = vld [vmem:[%s3744_s0 + $0xa0] sm:$0xff]  ;;  %v58_v11 = vld [vmem:[%s3744_s0 + $0xa8] sm:$0xff] }
   0x5   :  { %129 = vmatpush.msra.mxu1 %v66_v3  ;;  %1996 = vmatpush.msra.mxu3 %v66_v3  ;;  %v55_v12 = vld [vmem:[%s3744_s0 + $0x90] sm:$0xff]  ;;  %v56_v13 = vld [vmem:[%s3744_s0 + $0x98] sm:$0xff]  ;;  %v53_v14 = vld [vmem:[%s3744_s0 + $0x80] sm:$0xff] }
   0x6   :  { %71 = vmatpush.msra.mxu0 %v63_v4  ;;  %1981 = vmatpush.msra.mxu2 %v63_v4  ;;  %v54_v15 = vld [vmem:[%s3744_s0 + $0x88] sm:$0xff]  ;;  %v51_v16 = vld [vmem:[%s3744_s0 + $0x70] sm:$0xff]  ;;  %v52_v17 = vld [vmem:[%s3744_s0 + $0x78] sm:$0xff] }
   0x7   :  { %130 = vmatpush.msra.mxu1 %v64_v5  ;;  %1997 = vmatpush.msra.mxu3 %v64_v5  ;;  %v49_v18 = vld [vmem:[%s3744_s0 + $0x60] sm:$0xff]  ;;  %v50_v19 = vld [vmem:[%s3744_s0 + $0x68] sm:$0xff]  ;;  %v47_v20 = vld [vmem:[%s3744_s0 + $0x50] sm:$0xff] }
   0x8   :  { %72 = vmatpush.msra.mxu0 %v61_v6  ;;  %1982 = vmatpush.msra.mxu2 %v61_v6  ;;  %v48_v21 = vld [vmem:[%s3744_s0 + $0x58] sm:$0xff]  ;;  %v45_v22 = vld [vmem:[%s3744_s0 + $0x40] sm:$0xff]  ;;  %v46_v23 = vld [vmem:[%s3744_s0 + $0x48] sm:$0xff] }
   0x9   :  { %131 = vmatpush.msra.mxu1 %v62_v7  ;;  %1998 = vmatpush.msra.mxu3 %v62_v7  ;;  %v43_v24 = vld [vmem:[%s3744_s0 + $0x30] sm:$0xff]  ;;  %v44_v25 = vld [vmem:[%s3744_s0 + $0x38] sm:$0xff]  ;;  %v41_v26 = vld [vmem:[%s3744_s0 + $0x20] sm:$0xff] }
   0xa   :  { %73 = vmatpush.msra.mxu0 %v59_v8  ;;  %1983 = vmatpush.msra.mxu2 %v59_v8  ;;  %v42_v27 = vld [vmem:[%s3744_s0 + $0x28] sm:$0xff]  ;;  %v39_v28 = vld [vmem:[%s3744_s0 + $0x10] sm:$0xff]  ;;  %v40_v29 = vld [vmem:[%s3744_s0 + $0x18] sm:$0xff] }
   0xb   :  { %132 = vmatpush.msra.mxu1 %v60_v9  ;;  %1999 = vmatpush.msra.mxu3 %v60_v9  ;;  %v37_v30 = vld [vmem:[%s3744_s0] sm:$0xff]  ;;  %v38_v31 = vld [vmem:[%s3744_s0 + $0x8] sm:$0xff]  ;;  %v334_v34 = vld [vmem:[%s3746_s1 + $0x1f0] sm:$0xff] }
   0xc   :  { %74 = vmatpush.msra.mxu0 %v57_v10  ;;  %1984 = vmatpush.msra.mxu2 %v57_v10  ;;  %v23_v32 = vld [vmem:[%s3745_s4] sm:$0xff]  ;;  %v302_v35 = vld [vmem:[%s3746_s1 + $0xf0] sm:$0xff]  ;;  %v335_v36 = vld [vmem:[%s3746_s1 + $0x1f8] sm:$0xff] }
   0xd   :  { %133 = vmatpush.msra.mxu1 %v58_v11  ;;  %2000 = vmatpush.msra.mxu3 %v58_v11  ;;  %v30_v33 = vld [vmem:[%s3745_s4 + $0xe0] sm:$0xff]  ;;  %v303_v37 = vld [vmem:[%s3746_s1 + $0xf8] sm:$0xff]  ;;  %v333_v40 = vld [vmem:[%s3746_s1 + $0x1e8] sm:$0xff] }
   0xe   :  { %75 = vmatpush.msra.mxu0 %v55_v12  ;;  %1985 = vmatpush.msra.mxu2 %v55_v12  ;;  %v332_v38 = vld [vmem:[%s3746_s1 + $0x1e0] sm:$0xff]  ;;  %v301_v41 = vld [vmem:[%s3746_s1 + $0xe8] sm:$0xff]  ;;  %v330_v42 = vld [vmem:[%s3746_s1 + $0x1d0] sm:$0xff] }
   0xf   :  { %134 = vmatpush.msra.mxu1 %v56_v13  ;;  %2001 = vmatpush.msra.mxu3 %v56_v13  ;;  %v300_v39 = vld [vmem:[%s3746_s1 + $0xe0] sm:$0xff]  ;;  %v298_v43 = vld [vmem:[%s3746_s1 + $0xd0] sm:$0xff]  ;;  %v331_v44 = vld [vmem:[%s3746_s1 + $0x1d8] sm:$0xff] }
  0x10   :  { %76 = vmatpush.msra.mxu0 %v53_v14  ;;  %1986 = vmatpush.msra.mxu2 %v53_v14  ;;  %v299_v45 = vld [vmem:[%s3746_s1 + $0xd8] sm:$0xff]  ;;  %v24_v46 = vld [vmem:[%s3745_s4 + $0x20] sm:$0xff]  ;;  %v329_v50 = vld [vmem:[%s3746_s1 + $0x1c8] sm:$0xff] }
  0x11   :  { %135 = vmatpush.msra.mxu1 %v54_v15  ;;  %2002 = vmatpush.msra.mxu3 %v54_v15  ;;  %v31_v47 = vld [vmem:[%s3745_s4 + $0x100] sm:$0xff]  ;;  %v297_v51 = vld [vmem:[%s3746_s1 + $0xc8] sm:$0xff]  ;;  %v326_v52 = vld [vmem:[%s3746_s1 + $0x1b0] sm:$0xff] }
  0x12   :  { %77 = vmatpush.msra.mxu0 %v51_v16  ;;  %1987 = vmatpush.msra.mxu2 %v51_v16  ;;  %v328_v48 = vld [vmem:[%s3746_s1 + $0x1c0] sm:$0xff]  ;;  %v294_v53 = vld [vmem:[%s3746_s1 + $0xb0] sm:$0xff]  ;;  %v327_v54 = vld [vmem:[%s3746_s1 + $0x1b8] sm:$0xff] }
  0x13   :  { %136 = vmatpush.msra.mxu1 %v52_v17  ;;  %2003 = vmatpush.msra.mxu3 %v52_v17  ;;  %v296_v49 = vld [vmem:[%s3746_s1 + $0xc0] sm:$0xff]  ;;  %v295_v55 = vld [vmem:[%s3746_s1 + $0xb8] sm:$0xff]  ;;  %v325_v58 = vld [vmem:[%s3746_s1 + $0x1a8] sm:$0xff] }
  0x14   :  { %78 = vmatpush.msra.mxu0 %v49_v18  ;;  %1988 = vmatpush.msra.mxu2 %v49_v18  ;;  %v324_v56 = vld [vmem:[%s3746_s1 + $0x1a0] sm:$0xff]  ;;  %v293_v59 = vld [vmem:[%s3746_s1 + $0xa8] sm:$0xff]  ;;  %v322_v62 = vld [vmem:[%s3746_s1 + $0x190] sm:$0xff] }
  0x15   :  { %137 = vmatpush.msra.mxu1 %v50_v19  ;;  %2004 = vmatpush.msra.mxu3 %v50_v19  ;;  %v292_v57 = vld [vmem:[%s3746_s1 + $0xa0] sm:$0xff]  ;;  %v290_v63 = vld [vmem:[%s3746_s1 + $0x90] sm:$0xff]  ;;  %v291_v0 = vld [vmem:[%s3746_s1 + $0x98] sm:$0xff] }
  0x16   :  { %79 = vmatpush.msra.mxu0 %v47_v20  ;;  %1989 = vmatpush.msra.mxu2 %v47_v20  ;;  %v25_v60 = vld [vmem:[%s3745_s4 + $0x40] sm:$0xff]  ;;  %v323_v1 = vld [vmem:[%s3746_s1 + $0x198] sm:$0xff]  ;;  %v289_v4 = vld [vmem:[%s3746_s1 + $0x88] sm:$0xff] }
  0x17   :  { %138 = vmatpush.msra.mxu1 %v48_v21  ;;  %2005 = vmatpush.msra.mxu3 %v48_v21  ;;  %v32_v61 = vld [vmem:[%s3745_s4 + $0x120] sm:$0xff]  ;;  %v321_v5 = vld [vmem:[%s3746_s1 + $0x188] sm:$0xff]  ;;  %v318_v6 = vld [vmem:[%s3746_s1 + $0x170] sm:$0xff] }
  0x18   :  { %80 = vmatpush.msra.mxu0 %v45_v22  ;;  %1990 = vmatpush.msra.mxu2 %v45_v22  ;;  %v320_v2 = vld [vmem:[%s3746_s1 + $0x180] sm:$0xff]  ;;  %v286_v7 = vld [vmem:[%s3746_s1 + $0x70] sm:$0xff]  ;;  %v287_v8 = vld [vmem:[%s3746_s1 + $0x78] sm:$0xff] }
  0x19   :  { %139 = vmatpush.msra.mxu1 %v46_v23  ;;  %2006 = vmatpush.msra.mxu3 %v46_v23  ;;  %v288_v3 = vld [vmem:[%s3746_s1 + $0x80] sm:$0xff]  ;;  %v319_v9 = vld [vmem:[%s3746_s1 + $0x178] sm:$0xff]  ;;  %v285_v14 = vld [vmem:[%s3746_s1 + $0x68] sm:$0xff] }
  0x1a   :  { %81 = vmatpush.msra.mxu0 %v43_v24  ;;  %1991 = vmatpush.msra.mxu2 %v43_v24  ;;  %v26_v10 = vld [vmem:[%s3745_s4 + $0x60] sm:$0xff]  ;;  %v317_v15 = vld [vmem:[%s3746_s1 + $0x168] sm:$0xff]  ;;  %v314_v16 = vld [vmem:[%s3746_s1 + $0x150] sm:$0xff] }
  0x1b   :  { %140 = vmatpush.msra.mxu1 %v44_v25  ;;  %2007 = vmatpush.msra.mxu3 %v44_v25  ;;  %v33_v11 = vld [vmem:[%s3745_s4 + $0x140] sm:$0xff]  ;;  %v282_v17 = vld [vmem:[%s3746_s1 + $0x50] sm:$0xff]  ;;  %v283_v18 = vld [vmem:[%s3746_s1 + $0x58] sm:$0xff] }
  0x1c   :  { %82 = vmatpush.msra.mxu0 %v41_v26  ;;  %1992 = vmatpush.msra.mxu2 %v41_v26  ;;  %v316_v12 = vld [vmem:[%s3746_s1 + $0x160] sm:$0xff]  ;;  %v315_v19 = vld [vmem:[%s3746_s1 + $0x158] sm:$0xff]  ;;  %v281_v22 = vld [vmem:[%s3746_s1 + $0x48] sm:$0xff] }
  0x1d   :  { %141 = vmatpush.msra.mxu1 %v42_v27  ;;  %2008 = vmatpush.msra.mxu3 %v42_v27  ;;  %v284_v13 = vld [vmem:[%s3746_s1 + $0x60] sm:$0xff]  ;;  %v313_v23 = vld [vmem:[%s3746_s1 + $0x148] sm:$0xff]  ;;  %v310_v26 = vld [vmem:[%s3746_s1 + $0x130] sm:$0xff] }
  0x1e   :  { %83 = vmatpush.msra.mxu0 %v39_v28  ;;  %1993 = vmatpush.msra.mxu2 %v39_v28  ;;  %v312_v20 = vld [vmem:[%s3746_s1 + $0x140] sm:$0xff]  ;;  %v278_v27 = vld [vmem:[%s3746_s1 + $0x30] sm:$0xff]  ;;  %v279_v28 = vld [vmem:[%s3746_s1 + $0x38] sm:$0xff] }
  0x1f   :  { %142 = vmatpush.msra.mxu1 %v40_v29  ;;  %2009 = vmatpush.msra.mxu3 %v40_v29  ;;  %v280_v21 = vld [vmem:[%s3746_s1 + $0x40] sm:$0xff]  ;;  %v311_v29 = vld [vmem:[%s3746_s1 + $0x138] sm:$0xff] }
  0x20   :  { %84 = vmatpush.msra.mxu0 %v37_v30  ;;  %1994 = vmatpush.msra.mxu2 %v37_v30  ;;  %v27_v24 = vld [vmem:[%s3745_s4 + $0x80] sm:$0xff] }
  0x21   :  { %143 = vmatpush.msra.mxu1 %v38_v31  ;;  %2010 = vmatpush.msra.mxu3 %v38_v31  ;;  %v34_v25 = vld [vmem:[%s3745_s4 + $0x160] sm:$0xff] }
  0x22   :  { %85 = vmatmul.f32.vlgmr.msra.gmra.mxu0 %v23_v32  ;;  %106 = vmatmul.f32.vlgmr.msra.gmra.mxu2 %v30_v33  ;;  %v308_v30 = vld [vmem:[%s3746_s1 + $0x120] sm:$0xff] }
  0x23   :  { %144 = vmatmul.f32.vlgmr.msra.gmra.mxu1 %v23_v32  ;;  %165 = vmatmul.f32.vlgmr.msra.gmra.mxu3 %v30_v33  ;;  %v276_v31 = vld [vmem:[%s3746_s1 + $0x20] sm:$0xff]  ;;  %v277_v32 = vld [vmem:[%s3746_s1 + $0x28] sm:$0xff] }
  0x24   :  { %395 = vmatpush.msrb.mxu3 %v334_v34  ;;  %336 = vmatpush.msrb.mxu2 %v302_v35  ;;  %v309_v33 = vld [vmem:[%s3746_s1 + $0x128] sm:$0xff]  ;;  %v306_v34 = vld [vmem:[%s3746_s1 + $0x110] sm:$0xff] }
  0x25   :  { %513 = vmatpush.msrb.mxu1 %v335_v36  ;;  %454 = vmatpush.msrb.mxu0 %v303_v37  ;;  %v274_v35 = vld [vmem:[%s3746_s1 + $0x10] sm:$0xff]  ;;  %v275_v36 = vld [vmem:[%s3746_s1 + $0x18] sm:$0xff] }
  0x26   :  { %396 = vmatpush.msrb.mxu3 %v332_v38  ;;  %337 = vmatpush.msrb.mxu2 %v300_v39  ;;  %v307_v37 = vld [vmem:[%s3746_s1 + $0x118] sm:$0xff]  ;;  %v28_v38 = vld [vmem:[%s3745_s4 + $0xa0] sm:$0xff] }
  0x27   :  { %514 = vmatpush.msrb.mxu1 %v333_v40  ;;  %455 = vmatpush.msrb.mxu0 %v301_v41  ;;  %v35_v39 = vld [vmem:[%s3745_s4 + $0x180] sm:$0xff] }
  0x28   :  { %397 = vmatpush.msrb.mxu3 %v330_v42  ;;  %338 = vmatpush.msrb.mxu2 %v298_v43  ;;  %v304_v40 = vld [vmem:[%s3746_s1 + $0x100] sm:$0xff]  ;;  %v273_v42 = vld [vmem:[%s3746_s1 + $0x8] sm:$0xff] }
  0x29   :  { %515 = vmatpush.msrb.mxu1 %v331_v44  ;;  %456 = vmatpush.msrb.mxu0 %v299_v45  ;;  %v272_v41 = vld [vmem:[%s3746_s1] sm:$0xff]  ;;  %v305_v43 = vld [vmem:[%s3746_s1 + $0x108] sm:$0xff]  ;;  %v685_v44 = vld [vmem:[%s3747_s2 + $0x78] sm:$0xff] }
  0x2a   :  { %88 = vmatmul.f32.gmra.mxu0 %v24_v46  ;;  %109 = vmatmul.f32.gmra.mxu2 %v31_v47  ;;  %v684_v45 = vld [vmem:[%s3747_s2 + $0x70] sm:$0xff] }
  0x2b   :  { %147 = vmatmul.f32.gmra.mxu1 %v24_v46  ;;  %168 = vmatmul.f32.gmra.mxu3 %v31_v47  ;;  %v2432_v46 = vld [vmem:[%s3745_s4 + $0x18] sm:$0xff] }
  0x2c   :  { %398 = vmatpush.msrb.mxu3 %v328_v48  ;;  %339 = vmatpush.msrb.mxu2 %v296_v49  ;;  %v960_v47 = vld [vmem:[%s3748_s3 + $0x78] sm:$0xff]  ;;  %v683_v48 = vld [vmem:[%s3747_s2 + $0x68] sm:$0xff]  ;;  %v682_v49 = vld [vmem:[%s3747_s2 + $0x60] sm:$0xff] }
  0x2d   :  { %516 = vmatpush.msrb.mxu1 %v329_v50  ;;  %457 = vmatpush.msrb.mxu0 %v297_v51  ;;  %v959_v50 = vld [vmem:[%s3748_s3 + $0x70] sm:$0xff]  ;;  %v29_v51 = vld [vmem:[%s3745_s4 + $0xc0] sm:$0xff] }
  0x2e   :  { %399 = vmatpush.msrb.mxu3 %v326_v52  ;;  %340 = vmatpush.msrb.mxu2 %v294_v53  ;;  %v36_v52 = vld [vmem:[%s3745_s4 + $0x1a0] sm:$0xff]  ;;  %v2457_v53 = vld [vmem:[%s3745_s4 + $0x58] sm:$0xff] }
  0x2f   :  { %517 = vmatpush.msrb.mxu1 %v327_v54  ;;  %458 = vmatpush.msrb.mxu0 %v295_v55  ;;  %v681_v54 = vld [vmem:[%s3747_s2 + $0x58] sm:$0xff]  ;;  %v680_v55 = vld [vmem:[%s3747_s2 + $0x50] sm:$0xff] }
  0x30   :  { %400 = vmatpush.msrb.mxu3 %v324_v56  ;;  %341 = vmatpush.msrb.mxu2 %v292_v57  ;;  %v958_v56 = vld [vmem:[%s3748_s3 + $0x68] sm:$0xff]  ;;  %v2473_v57 = vld [vmem:[%s3745_s4 + $0x38] sm:$0xff] }
  0x31   :  { %518 = vmatpush.msrb.mxu1 %v325_v58  ;;  %459 = vmatpush.msrb.mxu0 %v293_v59  ;;  %v957_v58 = vld [vmem:[%s3748_s3 + $0x60] sm:$0xff]  ;;  %v244_v59 = vld [vmem:[%s3745_s4 + $0x8] sm:$0xff] }
  0x32   :  { %91 = vmatmul.f32.gmra.mxu0 %v25_v60  ;;  %112 = vmatmul.f32.gmra.mxu2 %v32_v61 }
  0x33   :  { %150 = vmatmul.f32.gmra.mxu1 %v25_v60  ;;  %171 = vmatmul.f32.gmra.mxu3 %v32_v61  ;;  %v2486_v60 = vld [vmem:[%s3745_s4 + $0x78] sm:$0xff]  ;;  %v245_v61 = vld [vmem:[%s3745_s4 + $0x10] sm:$0xff] }
  0x34   :  { %401 = vmatpush.msrb.mxu3 %v322_v62  ;;  %342 = vmatpush.msrb.mxu2 %v290_v63  ;;  %v246_v62 = vld [vmem:[%s3745_s4 + $0x28] sm:$0xff]  ;;  %v247_v63 = vld [vmem:[%s3745_s4 + $0x30] sm:$0xff] }
  0x35   :  { %460 = vmatpush.msrb.mxu0 %v291_v0  ;;  %519 = vmatpush.msrb.mxu1 %v323_v1  ;;  %v679_v0 = vld [vmem:[%s3747_s2 + $0x48] sm:$0xff]  ;;  %v678_v1 = vld [vmem:[%s3747_s2 + $0x40] sm:$0xff] }
  0x36   :  { %402 = vmatpush.msrb.mxu3 %v320_v2  ;;  %343 = vmatpush.msrb.mxu2 %v288_v3  ;;  %v956_v2 = vld [vmem:[%s3748_s3 + $0x58] sm:$0xff]  ;;  %v955_v3 = vld [vmem:[%s3748_s3 + $0x50] sm:$0xff] }
  0x37   :  { %461 = vmatpush.msrb.mxu0 %v289_v4  ;;  %520 = vmatpush.msrb.mxu1 %v321_v5  ;;  %v248_v4 = vld [vmem:[%s3745_s4 + $0x48] sm:$0xff]  ;;  %v249_v5 = vld [vmem:[%s3745_s4 + $0x50] sm:$0xff] }
  0x38   :  { %403 = vmatpush.msrb.mxu3 %v318_v6  ;;  %344 = vmatpush.msrb.mxu2 %v286_v7  ;;  %v250_v6 = vld [vmem:[%s3745_s4 + $0x68] sm:$0xff]  ;;  %v2523_v7 = vld [vmem:[%s3745_s4 + $0xd8] sm:$0xff] }
  0x39   :  { %462 = vmatpush.msrb.mxu0 %v287_v8  ;;  %521 = vmatpush.msrb.mxu1 %v319_v9  ;;  %v251_v8 = vld [vmem:[%s3745_s4 + $0x70] sm:$0xff]  ;;  %v677_v9 = vld [vmem:[%s3747_s2 + $0x38] sm:$0xff] }
  0x3a   :  { %94 = vmatmul.f32.gmra.mxu0 %v26_v10  ;;  %115 = vmatmul.f32.gmra.mxu2 %v33_v11 }
  0x3b   :  { %153 = vmatmul.f32.gmra.mxu1 %v26_v10  ;;  %174 = vmatmul.f32.gmra.mxu3 %v33_v11  ;;  %v676_v10 = vld [vmem:[%s3747_s2 + $0x30] sm:$0xff]  ;;  %v954_v11 = vld [vmem:[%s3748_s3 + $0x48] sm:$0xff] }
  0x3c   :  { %404 = vmatpush.msrb.mxu3 %v316_v12  ;;  %345 = vmatpush.msrb.mxu2 %v284_v13  ;;  %v953_v12 = vld [vmem:[%s3748_s3 + $0x40] sm:$0xff]  ;;  %v252_v13 = vld [vmem:[%s3745_s4 + $0x88] sm:$0xff] }
  0x3d   :  { %463 = vmatpush.msrb.mxu0 %v285_v14  ;;  %522 = vmatpush.msrb.mxu1 %v317_v15  ;;  %v2548_v14 = vld [vmem:[%s3745_s4 + $0x98] sm:$0xff] }
  0x3e   :  { %405 = vmatpush.msrb.mxu3 %v314_v16  ;;  %346 = vmatpush.msrb.mxu2 %v282_v17  ;;  %v2553_v15 = vld [vmem:[%s3745_s4 + $0xf8] sm:$0xff]  ;;  %v253_v16 = vld [vmem:[%s3745_s4 + $0x90] sm:$0xff]  ;;  %v254_v17 = vld [vmem:[%s3745_s4 + $0xa8] sm:$0xff] }
  0x3f   :  { %464 = vmatpush.msrb.mxu0 %v283_v18  ;;  %523 = vmatpush.msrb.mxu1 %v315_v19  ;;  %v2568_v18 = vld [vmem:[%s3745_s4 + $0xb8] sm:$0xff]  ;;  %v255_v19 = vld [vmem:[%s3745_s4 + $0xb0] sm:$0xff] }
  0x40   :  { %406 = vmatpush.msrb.mxu3 %v312_v20  ;;  %347 = vmatpush.msrb.mxu2 %v280_v21  ;;  %v675_v20 = vld [vmem:[%s3747_s2 + $0x28] sm:$0xff]  ;;  %v674_v21 = vld [vmem:[%s3747_s2 + $0x20] sm:$0xff] }
  0x41   :  { %465 = vmatpush.msrb.mxu0 %v281_v22  ;;  %524 = vmatpush.msrb.mxu1 %v313_v23  ;;  %v952_v22 = vld [vmem:[%s3748_s3 + $0x38] sm:$0xff]  ;;  %v951_v23 = vld [vmem:[%s3748_s3 + $0x30] sm:$0xff] }
  0x42   :  { %97 = vmatmul.f32.gmra.mxu0 %v27_v24  ;;  %118 = vmatmul.f32.gmra.mxu2 %v34_v25 }
  0x43   :  { %156 = vmatmul.f32.gmra.mxu1 %v27_v24  ;;  %177 = vmatmul.f32.gmra.mxu3 %v34_v25  ;;  %v256_v24 = vld [vmem:[%s3745_s4 + $0xc8] sm:$0xff]  ;;  %v2593_v25 = vld [vmem:[%s3745_s4 + $0x138] sm:$0xff] }
  0x44   :  { %407 = vmatpush.msrb.mxu3 %v310_v26  ;;  %348 = vmatpush.msrb.mxu2 %v278_v27  ;;  %v257_v26 = vld [vmem:[%s3745_s4 + $0xd0] sm:$0xff]  ;;  %v258_v27 = vld [vmem:[%s3745_s4 + $0xe8] sm:$0xff] }
  0x45   :  { %466 = vmatpush.msrb.mxu0 %v279_v28  ;;  %525 = vmatpush.msrb.mxu1 %v311_v29  ;;  %v673_v28 = vld [vmem:[%s3747_s2 + $0x18] sm:$0xff] }
  0x46   :  { %408 = vmatpush.msrb.mxu3 %v308_v30  ;;  %349 = vmatpush.msrb.mxu2 %v276_v31  ;;  %v2609_v29 = vld [vmem:[%s3745_s4 + $0x158] sm:$0xff]  ;;  %v259_v30 = vld [vmem:[%s3745_s4 + $0xf0] sm:$0xff] }
  0x47   :  { %467 = vmatpush.msrb.mxu0 %v277_v32  ;;  %526 = vmatpush.msrb.mxu1 %v309_v33  ;;  %v672_v31 = vld [vmem:[%s3747_s2 + $0x10] sm:$0xff]  ;;  %v950_v32 = vld [vmem:[%s3748_s3 + $0x28] sm:$0xff]  ;;  %v949_v33 = vld [vmem:[%s3748_s3 + $0x20] sm:$0xff] }
  0x48   :  { %409 = vmatpush.msrb.mxu3 %v306_v34  ;;  %350 = vmatpush.msrb.mxu2 %v274_v35  ;;  %v260_v34 = vld [vmem:[%s3745_s4 + $0x108] sm:$0xff]  ;;  %v2631_v35 = vld [vmem:[%s3745_s4 + $0x118] sm:$0xff] }
  0x49   :  { %468 = vmatpush.msrb.mxu0 %v275_v36  ;;  %527 = vmatpush.msrb.mxu1 %v307_v37  ;;  %v261_v36 = vld [vmem:[%s3745_s4 + $0x110] sm:$0xff]  ;;  %v671_v37 = vld [vmem:[%s3747_s2 + $0x8] sm:$0xff] }
  0x4a   :  { %100 = vmatmul.f32.gmra.mxu0 %v28_v38  ;;  %121 = vmatmul.f32.gmra.mxu2 %v35_v39 }
  0x4b   :  { %159 = vmatmul.f32.gmra.mxu1 %v28_v38  ;;  %180 = vmatmul.f32.gmra.mxu3 %v35_v39  ;;  %v262_v38 = vld [vmem:[%s3745_s4 + $0x128] sm:$0xff] }
  0x4c   :  { %410 = vmatpush.msrb.mxu3 %v304_v40  ;;  %351 = vmatpush.msrb.mxu2 %v272_v41  ;;  %v670_v40 = vld [vmem:[%s3747_s2] sm:$0xff]  ;;  %v948_v41 = vld [vmem:[%s3748_s3 + $0x18] sm:$0xff] }
  0x4d   :  { %469 = vmatpush.msrb.mxu0 %v273_v42  ;;  %528 = vmatpush.msrb.mxu1 %v305_v43  ;;  %v2655_v42 = vld [vmem:[%s3745_s4 + $0x198] sm:$0xff] }
  0x4e   :  { %796 = vmatpush.msra.mxu3 %v685_v44  ;;  %737 = vmatpush.msra.mxu2 %v684_v45  ;;  %v263_v44 = vld [vmem:[%s3745_s4 + $0x130] sm:$0xff] }
  0x4f   :  { %975 = vrot.lane.b32.xlu0 %v2432_v46, %s2060_s7  ;;  %1098 = vmatpush.msra.mxu1 %v960_v47  ;;  %v947_v45 = vld [vmem:[%s3748_s3 + $0x10] sm:$0xff] }
  0x50   :  { %797 = vmatpush.msra.mxu3 %v683_v48  ;;  %738 = vmatpush.msra.mxu2 %v682_v49 }
  0x51   :  { %1039 = vmatpush.msra.mxu0 %v959_v50  ;;  %979 = vrot.lane.b32.xlu1 %v2457_v53, %s2060_s7  ;;  %v264_v50 = vld [vmem:[%s3745_s4 + $0x148] sm:$0xff] }
  0x52   :  { %103 = vmatmul.f32.gmra.mxu0 %v29_v51  ;;  %124 = vmatmul.f32.gmra.mxu2 %v36_v52 }
  0x53   :  { %162 = vmatmul.f32.gmra.mxu1 %v29_v51  ;;  %183 = vmatmul.f32.gmra.mxu3 %v36_v52  ;;  %v2683_v51 = vld [vmem:[%s3745_s4 + $0x1b8] sm:$0xff] }
  0x54   :  { %798 = vmatpush.msra.mxu3 %v681_v54  ;;  %739 = vmatpush.msra.mxu2 %v680_v55  ;;  %v265_v54 = vld [vmem:[%s3745_s4 + $0x150] sm:$0xff]  ;;  %v946_v55 = vld [vmem:[%s3748_s3 + $0x8] sm:$0xff] }
  0x55   :  { %1099 = vmatpush.msra.mxu1 %v958_v56  ;;  %1040 = vmatpush.msra.mxu0 %v957_v58 }
  0x56   :  { %799 = vmatpush.msra.mxu3 %v679_v0  ;;  %740 = vmatpush.msra.mxu2 %v678_v1  ;;  %v267_v1 = vld [vmem:[%s3745_s4 + $0x170] sm:$0xff] }
  0x57   :  { %977 = vrot.lane.b32.xlu0 %v2473_v57, %s2060_s7  ;;  %1100 = vmatpush.msra.mxu1 %v956_v2 }
  0x58   :  { %1041 = vmatpush.msra.mxu0 %v955_v3  ;;  %800 = vmatpush.msra.mxu3 %v677_v9 }
  0x59   :  { %981 = vrot.lane.b32.xlu1 %v2486_v60, %s2060_s7  ;;  %741 = vmatpush.msra.mxu2 %v676_v10 }
  0x5a   :  { %352 = vmatmul.f32.vlgmr.msrb.gmra.mxu2 %v244_v59  ;;  %470 = vmatmul.f32.vlgmr.msrb.gmra.mxu0 %v244_v59 }
  0x5b   :  { %411 = vmatmul.f32.vlgmr.msrb.gmra.mxu3 %v245_v61  ;;  %529 = vmatmul.f32.vlgmr.msrb.gmra.mxu1 %v245_v61  ;;  %v266_v61 = vld [vmem:[%s3745_s4 + $0x168] sm:$0xff] }
  0x5c   :  { %1101 = vmatpush.msra.mxu1 %v954_v11  ;;  %1042 = vmatpush.msra.mxu0 %v953_v12  ;;  %v270_v12 = vld [vmem:[%s3745_s4 + $0x1a8] sm:$0xff] }
  0x5d   :  { %983 = vrot.lane.b32.xlu2 %v2548_v14, %s2060_s7  ;;  %801 = vmatpush.msra.mxu3 %v675_v20 }
  0x5e   :  { %742 = vmatpush.msra.mxu2 %v674_v21  ;;  %1102 = vmatpush.msra.mxu1 %v952_v22 }
  0x5f   :  { %987 = vrot.lane.b32.xlu0 %v2523_v7, %s2060_s7  ;;  %1043 = vmatpush.msra.mxu0 %v951_v23 }
  0x60   :  { %802 = vmatpush.msra.mxu3 %v673_v28  ;;  %743 = vmatpush.msra.mxu2 %v672_v31 }
  0x61   :  { %989 = vrot.lane.b32.xlu1 %v2553_v15, %s2060_s7  ;;  %1103 = vmatpush.msra.mxu1 %v950_v32 }
  0x62   :  { %355 = vmatmul.f32.gmra.mxu2 %v246_v62  ;;  %473 = vmatmul.f32.gmra.mxu0 %v246_v62  ;;  %v945_v62 = vld [vmem:[%s3748_s3] sm:$0xff] }
  0x63   :  { %414 = vmatmul.f32.gmra.mxu3 %v247_v63  ;;  %532 = vmatmul.f32.gmra.mxu1 %v247_v63  ;;  %v2714_v63 = vld [vmem:[%s3745_s4 + $0x178] sm:$0xff] }
  0x64   :  { %1044 = vmatpush.msra.mxu0 %v949_v33  ;;  %803 = vmatpush.msra.mxu3 %v671_v37 }
  0x65   :  { %985 = vrot.lane.b32.xlu2 %v2568_v18, %s2060_s7  ;;  %744 = vmatpush.msra.mxu2 %v670_v40 }
  0x66   :  { %1104 = vmatpush.msra.mxu1 %v948_v41  ;;  %1045 = vmatpush.msra.mxu0 %v947_v45 }
  0x67   :  { %993 = vrot.lane.b32.xlu0 %v2593_v25, %s2060_s7 }
  0x68   :  { %1105 = vmatpush.msra.mxu1 %v946_v55  ;;  %1046 = vmatpush.msra.mxu0 %v945_v62 }
  0x69   :  { %995 = vrot.lane.b32.xlu1 %v2609_v29, %s2060_s7 }
  0x6a   :  { %358 = vmatmul.f32.gmra.mxu2 %v248_v4  ;;  %476 = vmatmul.f32.gmra.mxu0 %v248_v4 }
  0x6b   :  { %417 = vmatmul.f32.gmra.mxu3 %v249_v5  ;;  %535 = vmatmul.f32.gmra.mxu1 %v249_v5  ;;  %v268_v5 = vld [vmem:[%s3745_s4 + $0x188] sm:$0xff] }
  0x6d   :  { %991 = vrot.lane.b32.xlu2 %v2631_v35, %s2060_s7 }
  0x6f   :  { %999 = vrot.lane.b32.xlu0 %v2655_v42, %s2060_s7 }
  0x71   :  { %1001 = vrot.lane.b32.xlu1 %v2683_v51, %s2060_s7 }
  0x72   :  { %361 = vmatmul.f32.gmra.mxu2 %v250_v6  ;;  %479 = vmatmul.f32.gmra.mxu0 %v250_v6 }
  0x73   :  { %420 = vmatmul.f32.gmra.mxu3 %v251_v8  ;;  %538 = vmatmul.f32.gmra.mxu1 %v251_v8  ;;  %v269_v8 = vld [vmem:[%s3745_s4 + $0x190] sm:$0xff] }
  0x75   :  { %997 = vrot.lane.b32.xlu2 %v2714_v63, %s2060_s7 }
  0x7a   :  { %364 = vmatmul.f32.gmra.mxu2 %v252_v13  ;;  %482 = vmatmul.f32.gmra.mxu0 %v252_v13 }
  0x7b   :  { %423 = vmatmul.f32.gmra.mxu3 %v253_v16  ;;  %541 = vmatmul.f32.gmra.mxu1 %v253_v16  ;;  %v271_v16 = vld [vmem:[%s3745_s4 + $0x1b0] sm:$0xff] }
  0x82   :  { %367 = vmatmul.f32.gmra.mxu2 %v254_v17  ;;  %485 = vmatmul.f32.gmra.mxu0 %v254_v17 }
  0x83   :  { %426 = vmatmul.f32.gmra.mxu3 %v255_v19  ;;  %544 = vmatmul.f32.gmra.mxu1 %v255_v19 }
  0x8a   :  { %370 = vmatmul.f32.gmra.mxu2 %v256_v24  ;;  %488 = vmatmul.f32.gmra.mxu0 %v256_v24 }
  0x8b   :  { %429 = vmatmul.f32.gmra.mxu3 %v257_v26  ;;  %547 = vmatmul.f32.gmra.mxu1 %v257_v26 }
  0x92   :  { %373 = vmatmul.f32.gmra.mxu2 %v258_v27  ;;  %491 = vmatmul.f32.gmra.mxu0 %v258_v27 }
  0x93   :  { %432 = vmatmul.f32.gmra.mxu3 %v259_v30  ;;  %550 = vmatmul.f32.gmra.mxu1 %v259_v30 }
  0x9a   :  { %376 = vmatmul.f32.gmra.mxu2 %v260_v34  ;;  %494 = vmatmul.f32.gmra.mxu0 %v260_v34 }
  0x9b   :  { %435 = vmatmul.f32.gmra.mxu3 %v261_v36  ;;  %553 = vmatmul.f32.gmra.mxu1 %v261_v36 }
  0x9f   :  { %v2644_v39 = vpop.f32.mrf.mxu0 }
  0xa0   :  { %v145_v43 = vpop.f32.mrf.mxu1 }
  0xa1   :  { %189 = vst.msk [vmem:[%s3749_s6 + $0x8] sm:$0xff] %vm188_vm0, %v145_v43 }
  0xa2   :  { %379 = vmatmul.f32.gmra.mxu2 %v262_v38  ;;  %497 = vmatmul.f32.gmra.mxu0 %v262_v38 }
  0xa3   :  { %438 = vmatmul.f32.gmra.mxu3 %v263_v44  ;;  %556 = vmatmul.f32.gmra.mxu1 %v263_v44 }
  0xa5   :  { %v2669_v47 = vpop.f32.mrf.mxu2 }
  0xa6   :  { %v166_v48 = vpop.f32.mrf.mxu3 }
  0xa7   :  { %203 = vst.msk [vmem:[%s3749_s6 + $0x78] sm:$0xff] %vm188_vm0, %v166_v48  ;;  %v2675_v49 = vpop.f32.mrf.mxu0 }
  0xa8   :  { %v148_v52 = vpop.f32.mrf.mxu1  ;;  %v217_v36 = vld [vmem:[%s3749_s6 + $0x8] sm:$0xff] }
  0xa9   :  { %191 = vst.msk [vmem:[%s3749_s6 + $0x18] sm:$0xff] %vm188_vm0, %v148_v52 }
  0xaa   :  { %382 = vmatmul.f32.gmra.mxu2 %v264_v50  ;;  %500 = vmatmul.f32.gmra.mxu0 %v264_v50 }
  0xab   :  { %441 = vmatmul.f32.gmra.mxu3 %v265_v54  ;;  %559 = vmatmul.f32.gmra.mxu1 %v265_v54 }
  0xad   :  { %v2697_v56 = vpop.f32.mrf.mxu2 }
  0xae   :  { %v169_v58 = vpop.f32.mrf.mxu3 }
  0xaf   :  { %205 = vst.msk [vmem:[%s3749_s6 + $0x88] sm:$0xff] %vm188_vm0, %v169_v58  ;;  %v2703_v59 = vpop.f32.mrf.mxu0 }
  0xb0   :  { %v151_v0 = vpop.f32.mrf.mxu1 }
  0xb1   :  { %193 = vst.msk [vmem:[%s3749_s6 + $0x28] sm:$0xff] %vm188_vm0, %v151_v0 }
  0xb2   :  { %385 = vmatmul.f32.gmra.mxu2 %v266_v61  ;;  %503 = vmatmul.f32.gmra.mxu0 %v266_v61 }
  0xb3   :  { %444 = vmatmul.f32.gmra.mxu3 %v267_v1  ;;  %562 = vmatmul.f32.gmra.mxu1 %v267_v1 }
  0xb5   :  { %v2725_v2 = vpop.f32.mrf.mxu2 }
  0xb6   :  { %v172_v3 = vpop.f32.mrf.mxu3 }
  0xb7   :  { %207 = vst.msk [vmem:[%s3749_s6 + $0x98] sm:$0xff] %vm188_vm0, %v172_v3  ;;  %v2731_v4 = vpop.f32.mrf.mxu0  ;;  %v984_v52 = vpop.permute.xlu2 %983 }
  0xb8   :  { %v154_v6 = vpop.f32.mrf.mxu1 }
  0xb9   :  { %195 = vst.msk [vmem:[%s3749_s6 + $0x38] sm:$0xff] %vm188_vm0, %v154_v6 }
  0xba   :  { %388 = vmatmul.f32.gmra.mxu2 %v268_v5  ;;  %506 = vmatmul.f32.gmra.mxu0 %v268_v5 }
  0xbb   :  { %447 = vmatmul.f32.gmra.mxu3 %v269_v8  ;;  %565 = vmatmul.f32.gmra.mxu1 %v269_v8 }
  0xbd   :  { %v2743_v9 = vpop.f32.mrf.mxu2 }
  0xbe   :  { %v175_v10 = vpop.f32.mrf.mxu3 }
  0xbf   :  { %209 = vst.msk [vmem:[%s3749_s6 + $0xa8] sm:$0xff] %vm188_vm0, %v175_v10  ;;  %v2749_v11 = vpop.f32.mrf.mxu0  ;;  %v986_v8 = vpop.permute.xlu2 %985 }
  0xc0   :  { %v157_v13 = vpop.f32.mrf.mxu1 }
  0xc1   :  { %197 = vst.msk [vmem:[%s3749_s6 + $0x48] sm:$0xff] %vm188_vm0, %v157_v13  ;;  %v976_v19 = vpop.permute.xlu0 %975 }
  0xc2   :  { %391 = vmatmul.f32.gmra.mxu2 %v270_v12  ;;  %509 = vmatmul.f32.gmra.mxu0 %v270_v12 }
  0xc3   :  { %450 = vmatmul.f32.gmra.mxu3 %v271_v16  ;;  %568 = vmatmul.f32.gmra.mxu1 %v271_v16  ;;  %v980_v30 = vpop.permute.xlu1 %979 }
  0xc5   :  { %v2761_v17 = vpop.f32.mrf.mxu2 }
  0xc6   :  { %v178_v20 = vpop.f32.mrf.mxu3 }
  0xc7   :  { %211 = vst.msk [vmem:[%s3749_s6 + $0xb8] sm:$0xff] %vm188_vm0, %v178_v20  ;;  %v2767_v21 = vpop.f32.mrf.mxu0 }
  0xc8   :  { %v160_v22 = vpop.f32.mrf.mxu1 }
  0xc9   :  { %199 = vst.msk [vmem:[%s3749_s6 + $0x58] sm:$0xff] %vm188_vm0, %v160_v22  ;;  %v978_v27 = vpop.permute.xlu0 %977 }
  0xca   :  { %1923 = vmatmul.msk.f32.vlgmr.msra.gmra.mxu2 %vm686_vm1, %v2432_v46  ;;  %1951 = vmatmul.msk.f32.vlgmr.msra.gmra.mxu0 %vm686_vm1, %v976_v19 }
  0xcb   :  { %1937 = vmatmul.msk.f32.vlgmr.msra.gmra.mxu3 %vm686_vm1, %v2432_v46  ;;  %1965 = vmatmul.msk.f32.vlgmr.msra.gmra.mxu1 %vm686_vm1, %v976_v19  ;;  %v982_v43 = vpop.permute.xlu1 %981 }
  0xcd   :  { %v2779_v23 = vpop.f32.mrf.mxu2 }
  0xce   :  { %v181_v24 = vpop.f32.mrf.mxu3 }
  0xcf   :  { %213 = vst.msk [vmem:[%s3749_s6 + $0xc8] sm:$0xff] %vm188_vm0, %v181_v24  ;;  %v2785_v26 = vpop.f32.mrf.mxu0 }
  0xd0   :  { %v163_v28 = vpop.f32.mrf.mxu1 }
  0xd1   :  { %201 = vst.msk [vmem:[%s3749_s6 + $0x68] sm:$0xff] %vm188_vm0, %v163_v28  ;;  %v988_v24 = vpop.permute.xlu0 %987 }
  0xd2   :  { %1924 = vmatmul.msk.f32.gmra.mxu2 %vm686_vm1, %v2473_v57  ;;  %1952 = vmatmul.msk.f32.gmra.mxu0 %vm686_vm1, %v978_v27 }
  0xd3   :  { %1938 = vmatmul.msk.f32.gmra.mxu3 %vm686_vm1, %v2473_v57  ;;  %1966 = vmatmul.msk.f32.gmra.mxu1 %vm686_vm1, %v978_v27 }
  0xd5   :  { %v2797_v46 = vpop.f32.mrf.mxu2 }
  0xd6   :  { %v184_v31 = vpop.f32.mrf.mxu3 }
  0xd7   :  { %215 = vst.msk [vmem:[%s3749_s6 + $0xd8] sm:$0xff] %vm188_vm0, %v184_v31  ;;  %v471_v32 = vpop.f32.mrf.mxu0 }
  0xd8   :  { %v530_v33 = vpop.f32.mrf.mxu1 }
  0xd9   :  { %v531_v34 = vadd.f32 %v530_v33, %v471_v32 }
  0xda   :  { %1925 = vmatmul.msk.f32.gmra.mxu2 %vm686_vm1, %v2457_v53  ;;  %1953 = vmatmul.msk.f32.gmra.mxu0 %vm686_vm1, %v980_v30 }
  0xdb   :  { %v573_v57 = vadd.f32 %v531_v34, %v217_v36  ;;  %1939 = vmatmul.msk.f32.gmra.mxu3 %vm686_vm1, %v2457_v53  ;;  %1967 = vmatmul.msk.f32.gmra.mxu1 %vm686_vm1, %v980_v30  ;;  %v219_v53 = vld [vmem:[%s3749_s6 + $0x18] sm:$0xff]  ;;  %v990_v36 = vpop.permute.xlu1 %989 }
  0xdd   :  { %601 = vst.msk [vmem:[%s3749_s6 + $0x8] sm:$0xff] %vm188_vm0, %v573_v57  ;;  %v353_v37 = vpop.f32.mrf.mxu2 }
  0xde   :  { %v412_v38 = vpop.f32.mrf.mxu3 }
  0xdf   :  { %v413_v40 = vadd.f32 %v412_v38, %v353_v37  ;;  %v474_v41 = vpop.f32.mrf.mxu0 }
  0xe0   :  { %v533_v44 = vpop.f32.mrf.mxu1 }
  0xe1   :  { %v2817_v45 = vadd.f32 %v413_v40, %v2644_v39  ;;  %v534_v48 = vadd.f32 %v533_v44, %v474_v41 }
  0xe2   :  { %1926 = vmatmul.msk.f32.gmra.mxu2 %vm686_vm1, %v2486_v60  ;;  %1954 = vmatmul.msk.f32.gmra.mxu0 %vm686_vm1, %v982_v43 }
  0xe3   :  { %v575_v50 = vadd.f32 %v534_v48, %v219_v53  ;;  %1940 = vmatmul.msk.f32.gmra.mxu3 %vm686_vm1, %v2486_v60  ;;  %1968 = vmatmul.msk.f32.gmra.mxu1 %vm686_vm1, %v982_v43  ;;  %v221_v60 = vld [vmem:[%s3749_s6 + $0x28] sm:$0xff]  ;;  %v992_v48 = vpop.permute.xlu2 %991 }
  0xe5   :  { %603 = vst.msk [vmem:[%s3749_s6 + $0x18] sm:$0xff] %vm188_vm0, %v575_v50  ;;  %v356_v39 = vpop.f32.mrf.mxu2 }
  0xe6   :  { %v415_v54 = vpop.f32.mrf.mxu3 }
  0xe7   :  { %v416_v55 = vadd.f32 %v415_v54, %v356_v39  ;;  %v477_v58 = vpop.f32.mrf.mxu0 }
  0xe8   :  { %v536_v61 = vpop.f32.mrf.mxu1 }
  0xe9   :  { %v2833_v62 = vadd.f32 %v416_v55, %v2675_v49  ;;  %v537_v0 = vadd.f32 %v536_v61, %v477_v58  ;;  %v994_v61 = vpop.permute.xlu0 %993 }
  0xea   :  { %1927 = vmatmul.msk.f32.gmra.mxu2 %vm686_vm1, %v2548_v14  ;;  %1955 = vmatmul.msk.f32.gmra.mxu0 %vm686_vm1, %v984_v52 }
  0xeb   :  { %v577_v1 = vadd.f32 %v537_v0, %v221_v60  ;;  %1941 = vmatmul.msk.f32.gmra.mxu3 %vm686_vm1, %v2548_v14  ;;  %1969 = vmatmul.msk.f32.gmra.mxu1 %vm686_vm1, %v984_v52  ;;  %v223_v14 = vld [vmem:[%s3749_s6 + $0x38] sm:$0xff] }
  0xed   :  { %605 = vst.msk [vmem:[%s3749_s6 + $0x28] sm:$0xff] %vm188_vm0, %v577_v1  ;;  %v359_v49 = vpop.f32.mrf.mxu2 }
  0xee   :  { %v418_v3 = vpop.f32.mrf.mxu3 }
  0xef   :  { %v419_v5 = vadd.f32 %v418_v3, %v359_v49  ;;  %v480_v6 = vpop.f32.mrf.mxu0 }
  0xf0   :  { %v539_v10 = vpop.f32.mrf.mxu1 }
  0xf1   :  { %v2849_v12 = vadd.f32 %v419_v5, %v2703_v59  ;;  %v540_v13 = vadd.f32 %v539_v10, %v480_v6 }
  0xf2   :  { %1928 = vmatmul.msk.f32.gmra.mxu2 %vm686_vm1, %v2568_v18  ;;  %1956 = vmatmul.msk.f32.gmra.mxu0 %vm686_vm1, %v986_v8 }
  0xf3   :  { %v579_v16 = vadd.f32 %v540_v13, %v223_v14  ;;  %1942 = vmatmul.msk.f32.gmra.mxu3 %vm686_vm1, %v2568_v18  ;;  %1970 = vmatmul.msk.f32.gmra.mxu1 %vm686_vm1, %v986_v8  ;;  %v225_v18 = vld [vmem:[%s3749_s6 + $0x48] sm:$0xff]  ;;  %v996_v8 = vpop.permute.xlu1 %995 }
  0xf4   :  { %v233_v14 = vld [vmem:[%s3749_s6 + $0x88] sm:$0xff] }
  0xf5   :  { %607 = vst.msk [vmem:[%s3749_s6 + $0x38] sm:$0xff] %vm188_vm0, %v579_v16  ;;  %v362_v59 = vpop.f32.mrf.mxu2 }
  0xf6   :  { %v421_v19 = vpop.f32.mrf.mxu3 }
  0xf7   :  { %v422_v20 = vadd.f32 %v421_v19, %v362_v59  ;;  %v483_v22 = vpop.f32.mrf.mxu0 }
  0xf8   :  { %v542_v27 = vpop.f32.mrf.mxu1 }
  0xf9   :  { %v2865_v28 = vadd.f32 %v422_v20, %v2731_v4  ;;  %v543_v30 = vadd.f32 %v542_v27, %v483_v22  ;;  %v998_v22 = vpop.permute.xlu2 %997 }
  0xfa   :  { %1929 = vmatmul.msk.f32.gmra.mxu2 %vm686_vm1, %v2523_v7  ;;  %1957 = vmatmul.msk.f32.gmra.mxu0 %vm686_vm1, %v988_v24 }
  0xfb   :  { %v581_v31 = vadd.f32 %v543_v30, %v225_v18  ;;  %1943 = vmatmul.msk.f32.gmra.mxu3 %vm686_vm1, %v2523_v7  ;;  %1971 = vmatmul.msk.f32.gmra.mxu1 %vm686_vm1, %v988_v24  ;;  %v227_v7 = vld [vmem:[%s3749_s6 + $0x58] sm:$0xff] }
  0xfc   :  { %v235_v30 = vld [vmem:[%s3749_s6 + $0x98] sm:$0xff] }
  0xfd   :  { %609 = vst.msk [vmem:[%s3749_s6 + $0x48] sm:$0xff] %vm188_vm0, %v581_v31  ;;  %v365_v4 = vpop.f32.mrf.mxu2 }
  0xfe   :  { %v424_v32 = vpop.f32.mrf.mxu3 }
  0xff   :  { %v425_v33 = vadd.f32 %v424_v32, %v365_v4  ;;  %v486_v34 = vpop.f32.mrf.mxu0 }
 0x100   :  { %v545_v57 = vpop.f32.mrf.mxu1 }
 0x101   :  { %v2881_v37 = vadd.f32 %v425_v33, %v2749_v11  ;;  %v546_v38 = vadd.f32 %v545_v57, %v486_v34  ;;  %v1000_v33 = vpop.permute.xlu0 %999  ;;  %v237_v57 = vld [vmem:[%s3749_s6 + $0xa8] sm:$0xff] }
 0x102   :  { %1930 = vmatmul.msk.f32.gmra.mxu2 %vm686_vm1, %v2553_v15  ;;  %1958 = vmatmul.msk.f32.gmra.mxu0 %vm686_vm1, %v990_v36 }
 0x103   :  { %v583_v40 = vadd.f32 %v546_v38, %v227_v7  ;;  %1944 = vmatmul.msk.f32.gmra.mxu3 %vm686_vm1, %v2553_v15  ;;  %1972 = vmatmul.msk.f32.gmra.mxu1 %vm686_vm1, %v990_v36  ;;  %v229_v15 = vld [vmem:[%s3749_s6 + $0x68] sm:$0xff] }
 0x105   :  { %611 = vst.msk [vmem:[%s3749_s6 + $0x58] sm:$0xff] %vm188_vm0, %v583_v40  ;;  %v368_v11 = vpop.f32.mrf.mxu2 }
 0x106   :  { %v427_v41 = vpop.f32.mrf.mxu3 }
 0x107   :  { %v428_v43 = vadd.f32 %v427_v41, %v368_v11  ;;  %v489_v44 = vpop.f32.mrf.mxu0  ;;  %v1002_v41 = vpop.permute.xlu1 %1001 }
 0x108   :  { %v548_v53 = vpop.f32.mrf.mxu1 }
 0x109   :  { %v2897_v50 = vadd.f32 %v428_v43, %v2767_v21  ;;  %v549_v39 = vadd.f32 %v548_v53, %v489_v44 }
 0x10a   :  { %1931 = vmatmul.msk.f32.gmra.mxu2 %vm686_vm1, %v2631_v35  ;;  %1959 = vmatmul.msk.f32.gmra.mxu0 %vm686_vm1, %v992_v48 }
 0x10b   :  { %v585_v52 = vadd.f32 %v549_v39, %v229_v15  ;;  %1945 = vmatmul.msk.f32.gmra.mxu3 %vm686_vm1, %v2631_v35  ;;  %1973 = vmatmul.msk.f32.gmra.mxu1 %vm686_vm1, %v992_v48  ;;  %v231_v35 = vld [vmem:[%s3749_s6 + $0x78] sm:$0xff] }
 0x10c   :  { %v239_v48 = vld [vmem:[%s3749_s6 + $0xb8] sm:$0xff] }
 0x10d   :  { %613 = vst.msk [vmem:[%s3749_s6 + $0x68] sm:$0xff] %vm188_vm0, %v585_v52  ;;  %v371_v21 = vpop.f32.mrf.mxu2 }
 0x10e   :  { %v430_v54 = vpop.f32.mrf.mxu3 }
 0x10f   :  { %v431_v55 = vadd.f32 %v430_v54, %v371_v21  ;;  %v492_v58 = vpop.f32.mrf.mxu0 }
 0x110   :  { %v551_v0 = vpop.f32.mrf.mxu1 }
 0x111   :  { %v2913_v60 = vadd.f32 %v431_v55, %v2785_v26  ;;  %v552_v1 = vadd.f32 %v551_v0, %v492_v58  ;;  %v241_v55 = vld [vmem:[%s3749_s6 + $0xc8] sm:$0xff] }
 0x112   :  { %1932 = vmatmul.msk.f32.gmra.mxu2 %vm686_vm1, %v2593_v25  ;;  %1960 = vmatmul.msk.f32.gmra.mxu0 %vm686_vm1, %v994_v61 }
 0x113   :  { %v587_v49 = vadd.f32 %v552_v1, %v231_v35  ;;  %1946 = vmatmul.msk.f32.gmra.mxu3 %vm686_vm1, %v2593_v25  ;;  %1974 = vmatmul.msk.f32.gmra.mxu1 %vm686_vm1, %v994_v61 }
 0x115   :  { %615 = vst.msk [vmem:[%s3749_s6 + $0x78] sm:$0xff] %vm188_vm0, %v587_v49  ;;  %v374_v26 = vpop.f32.mrf.mxu2 }
 0x116   :  { %v433_v3 = vpop.f32.mrf.mxu3 }
 0x117   :  { %v2928_v5 = vadd.f32 %v433_v3, %v374_v26  ;;  %v495_v6 = vpop.f32.mrf.mxu0  ;;  %v243_v26 = vld [vmem:[%s3749_s6 + $0xd8] sm:$0xff] }
 0x118   :  { %v554_v10 = vpop.f32.mrf.mxu1 }
 0x119   :  { %v555_v13 = vadd.f32 %v554_v10, %v495_v6 }
 0x11a   :  { %1933 = vmatmul.msk.f32.gmra.mxu2 %vm686_vm1, %v2609_v29  ;;  %1961 = vmatmul.msk.f32.gmra.mxu0 %vm686_vm1, %v996_v8 }
 0x11b   :  { %v589_v25 = vadd.f32 %v555_v13, %v233_v14  ;;  %1947 = vmatmul.msk.f32.gmra.mxu3 %vm686_vm1, %v2609_v29  ;;  %1975 = vmatmul.msk.f32.gmra.mxu1 %vm686_vm1, %v996_v8 }
 0x11d   :  { %617 = vst.msk [vmem:[%s3749_s6 + $0x88] sm:$0xff] %vm188_vm0, %v589_v25  ;;  %v377_v16 = vpop.f32.mrf.mxu2 }
 0x11e   :  { %v436_v59 = vpop.f32.mrf.mxu3 }
 0x11f   :  { %v2943_v19 = vadd.f32 %v436_v59, %v377_v16  ;;  %v498_v20 = vpop.f32.mrf.mxu0  ;;  %v629_v16 = vld [vmem:[%s3749_s6 + $0x8] sm:$0xff] }
 0x120   :  { %v557_v24 = vpop.f32.mrf.mxu1 }
 0x121   :  { %v558_v27 = vadd.f32 %v557_v24, %v498_v20 }
 0x122   :  { %1934 = vmatmul.msk.f32.gmra.mxu2 %vm686_vm1, %v2714_v63  ;;  %1962 = vmatmul.msk.f32.gmra.mxu0 %vm686_vm1, %v998_v22 }
 0x123   :  { %v591_v29 = vadd.f32 %v558_v27, %v235_v30  ;;  %1948 = vmatmul.msk.f32.gmra.mxu3 %vm686_vm1, %v2714_v63  ;;  %1976 = vmatmul.msk.f32.gmra.mxu1 %vm686_vm1, %v998_v22  ;;  %v631_v30 = vld [vmem:[%s3749_s6 + $0x18] sm:$0xff] }
 0x125   :  { %619 = vst.msk [vmem:[%s3749_s6 + $0x98] sm:$0xff] %vm188_vm0, %v591_v29  ;;  %v380_v18 = vpop.f32.mrf.mxu2 }
 0x126   :  { %v439_v31 = vpop.f32.mrf.mxu3 }
 0x127   :  { %v2958_v4 = vadd.f32 %v439_v31, %v380_v18  ;;  %v501_v32 = vpop.f32.mrf.mxu0 }
 0x128   :  { %v560_v34 = vpop.f32.mrf.mxu1 }
 0x129   :  { %v561_v36 = vadd.f32 %v560_v34, %v501_v32 }
 0x12a   :  { %1935 = vmatmul.msk.f32.gmra.mxu2 %vm686_vm1, %v2655_v42  ;;  %1963 = vmatmul.msk.f32.gmra.mxu0 %vm686_vm1, %v1000_v33 }
 0x12b   :  { %v593_v63 = vadd.f32 %v561_v36, %v237_v57  ;;  %1949 = vmatmul.msk.f32.gmra.mxu3 %vm686_vm1, %v2655_v42  ;;  %1977 = vmatmul.msk.f32.gmra.mxu1 %vm686_vm1, %v1000_v33 }
 0x12d   :  { %621 = vst.msk [vmem:[%s3749_s6 + $0xa8] sm:$0xff] %vm188_vm0, %v593_v63  ;;  %v383_v38 = vpop.f32.mrf.mxu2  ;;  %v633_v63 = vld [vmem:[%s3749_s6 + $0x28] sm:$0xff] }
 0x12e   :  { %v442_v7 = vpop.f32.mrf.mxu3 }
 0x12f   :  { %v2973_v40 = vadd.f32 %v442_v7, %v383_v38  ;;  %v504_v11 = vpop.f32.mrf.mxu0 }
 0x130   :  { %v563_v43 = vpop.f32.mrf.mxu1 }
 0x131   :  { %v564_v44 = vadd.f32 %v563_v43, %v504_v11 }
 0x132   :  { %1936 = vmatmul.msk.f32.gmra.mxu2 %vm686_vm1, %v2683_v51  ;;  %1964 = vmatmul.msk.f32.gmra.mxu0 %vm686_vm1, %v1002_v41 }
 0x133   :  { %v595_v42 = vadd.f32 %v564_v44, %v239_v48  ;;  %1950 = vmatmul.msk.f32.gmra.mxu3 %vm686_vm1, %v2683_v51  ;;  %1978 = vmatmul.msk.f32.gmra.mxu1 %vm686_vm1, %v1002_v41 }
 0x135   :  { %623 = vst.msk [vmem:[%s3749_s6 + $0xb8] sm:$0xff] %vm188_vm0, %v595_v42  ;;  %v386_v53 = vpop.f32.mrf.mxu2 }
 0x136   :  { %v445_v39 = vpop.f32.mrf.mxu3 }
 0x137   :  { %v2988_v15 = vadd.f32 %v445_v39, %v386_v53  ;;  %v507_v52 = vpop.f32.mrf.mxu0 }
 0x138   :  { %v566_v21 = vpop.f32.mrf.mxu1 }
 0x139   :  { %v567_v54 = vadd.f32 %v566_v21, %v507_v52 }
 0x13b   :  { %v597_v58 = vadd.f32 %v567_v54, %v241_v55 }
 0x13d   :  { %625 = vst.msk [vmem:[%s3749_s6 + $0xc8] sm:$0xff] %vm188_vm0, %v597_v58  ;;  %v389_v51 = vpop.f32.mrf.mxu2  ;;  %v635_v58 = vld [vmem:[%s3749_s6 + $0x38] sm:$0xff] }
 0x13e   :  { %v448_v61 = vpop.f32.mrf.mxu3 }
 0x13f   :  { %v2997_v0 = vadd.f32 %v448_v61, %v389_v51  ;;  %v510_v1 = vpop.f32.mrf.mxu0 }
 0x140   :  { %v569_v35 = vpop.f32.mrf.mxu1 }
 0x141   :  { %v570_v49 = vadd.f32 %v569_v35, %v510_v1 }
 0x143   :  { %v599_v3 = vadd.f32 %v570_v49, %v243_v26 }
 0x145   :  { %627 = vst.msk [vmem:[%s3749_s6 + $0xd8] sm:$0xff] %vm188_vm0, %v599_v3  ;;  %v392_v6 = vpop.f32.mrf.mxu2 }
 0x146   :  { %v451_v8 = vpop.f32.mrf.mxu3 }
 0x147   :  { %v3006_v10 = vadd.f32 %v451_v8, %v392_v6  ;;  %v1048_v13 = vpop.f32.mrf.mxu0 }
 0x148   :  { %v1107_v14 = vpop.f32.mrf.mxu1 }
 0x14d   :  { %v746_v25 = vpop.f32.mrf.mxu2 }
 0x14e   :  { %v805_v59 = vpop.f32.mrf.mxu3  ;;  %v847_v36 = vadd.f32 %v746_v25, %v2817_v45 }
 0x14f   :  { %v848_v20 = vadd.f32 %v805_v59, %v629_v16  ;;  %v1051_v22 = vpop.f32.mrf.mxu0 }
 0x150   :  { %v1110_v24 = vpop.f32.mrf.mxu1  ;;  %v3033_v11 = vadd.f32 %v1048_v13, %v847_v36 }
 0x151   :  { %876 = vst.msk [vmem:[%s3749_s6 + $0x8] sm:$0xff] %vm188_vm0, %v848_v20  ;;  %v637_v20 = vld [vmem:[%s3749_s6 + $0x48] sm:$0xff] }
 0x152   :  { %v1289_v21 = vmul.f32 %v3033_v11, %v3033_v11 }
 0x155   :  { %v749_v27 = vpop.f32.mrf.mxu2 }
 0x156   :  { %v808_v29 = vpop.f32.mrf.mxu3  ;;  %v849_v39 = vadd.f32 %v749_v27, %v2833_v62 }
 0x157   :  { %v850_v18 = vadd.f32 %v808_v29, %v631_v30  ;;  %v1054_v31 = vpop.f32.mrf.mxu0 }
 0x158   :  { %v904_v32 = vld [vmem:[%s3749_s6 + $0x8] sm:$0xff]  ;;  %v1113_v33 = vpop.f32.mrf.mxu1  ;;  %v3058_v35 = vadd.f32 %v1051_v22, %v849_v39 }
 0x159   :  { %878 = vst.msk [vmem:[%s3749_s6 + $0x18] sm:$0xff] %vm188_vm0, %v850_v18  ;;  %v1150_v34 = vadd.f32 %v1107_v14, %v904_v32 }
 0x15a   :  { %v1291_v25 = vmul.f32 %v3058_v35, %v3058_v35 }
 0x15b   :  { %1178 = vst.msk [vmem:[%s3749_s6 + $0x8] sm:$0xff] %vm188_vm0, %v1150_v34 }
 0x15d   :  { %v752_v57 = vpop.f32.mrf.mxu2 }
 0x15e   :  { %v811_v38 = vpop.f32.mrf.mxu3  ;;  %v851_v14 = vadd.f32 %v752_v57, %v2849_v12 }
 0x15f   :  { %v852_v7 = vadd.f32 %v811_v38, %v633_v63  ;;  %v1057_v44 = vpop.f32.mrf.mxu0 }
 0x160   :  { %v906_v41 = vld [vmem:[%s3749_s6 + $0x18] sm:$0xff]  ;;  %v1116_v43 = vpop.f32.mrf.mxu1  ;;  %v3083_v29 = vadd.f32 %v1054_v31, %v851_v14 }
 0x161   :  { %880 = vst.msk [vmem:[%s3749_s6 + $0x28] sm:$0xff] %vm188_vm0, %v852_v7  ;;  %v1152_v45 = vadd.f32 %v1110_v24, %v906_v41  ;;  %v639_v41 = vld [vmem:[%s3749_s6 + $0x58] sm:$0xff] }
 0x162   :  { %v1206_v48 = vld [vmem:[%s3749_s6 + $0x8] sm:$0xff]  ;;  %v1293_v57 = vmul.f32 %v3083_v29, %v3083_v29 }
 0x163   :  { %1180 = vst.msk [vmem:[%s3749_s6 + $0x18] sm:$0xff] %vm188_vm0, %v1152_v45  ;;  %v1233_v42 = vsel %vm188_vm0, %v1206_v48, 0.0  ;;  %v1290_v53 = vmul.f32 %v1206_v48, %v1206_v48 }
 0x164   :  { %v1234_v52 = vadd.f32 %v1233_v42, %v3033_v11 }
 0x165   :  { %v755_v54 = vpop.f32.mrf.mxu2  ;;  %v1317_v55 = vsel %vm188_vm0, %v1290_v53, 0.0 }
 0x166   :  { %v814_v51 = vpop.f32.mrf.mxu3  ;;  %1235 = vadd.xlane.f32.xlu2 %v1234_v52  ;;  %v1318_v61 = vadd.f32 %v1317_v55, %v1289_v21  ;;  %v853_v36 = vadd.f32 %v755_v54, %v2865_v28 }
 0x167   :  { %v854_v1 = vadd.f32 %v814_v51, %v635_v58  ;;  %v1060_v13 = vpop.f32.mrf.mxu0 }
 0x168   :  { %v908_v62 = vld [vmem:[%s3749_s6 + $0x28] sm:$0xff]  ;;  %1319 = vadd.xlane.f32.xlu0 %v1318_v61  ;;  %v1119_v49 = vpop.f32.mrf.mxu1  ;;  %v3108_v53 = vadd.f32 %v1057_v44, %v853_v36 }
 0x169   :  { %882 = vst.msk [vmem:[%s3749_s6 + $0x38] sm:$0xff] %vm188_vm0, %v854_v1  ;;  %v1154_v26 = vadd.f32 %v1113_v33, %v908_v62  ;;  %v641_v1 = vld [vmem:[%s3749_s6 + $0x68] sm:$0xff] }
 0x16a   :  { %v1208_v3 = vld [vmem:[%s3749_s6 + $0x18] sm:$0xff]  ;;  %v1295_v58 = vmul.f32 %v3108_v53, %v3108_v53 }
 0x16b   :  { %1182 = vst.msk [vmem:[%s3749_s6 + $0x28] sm:$0xff] %vm188_vm0, %v1154_v26  ;;  %v1292_v6 = vmul.f32 %v1208_v3, %v1208_v3  ;;  %v1237_v8 = vsel %vm188_vm0, %v1208_v3, 0.0 }
 0x16c   :  { %v1238_v27 = vadd.f32 %v1237_v8, %v3058_v35 }
 0x16d   :  { %v758_v16 = vpop.f32.mrf.mxu2  ;;  %v1321_v59 = vsel %vm188_vm0, %v1292_v6, 0.0 }
 0x16e   :  { %v817_v22 = vpop.f32.mrf.mxu3  ;;  %v1322_v24 = vadd.f32 %v1321_v59, %v1291_v25  ;;  %v855_v55 = vadd.f32 %v758_v16, %v2881_v37 }
 0x16f   :  { %v856_v30 = vadd.f32 %v817_v22, %v637_v20  ;;  %v1063_v7 = vpop.f32.mrf.mxu0 }
 0x170   :  { %v910_v12 = vld [vmem:[%s3749_s6 + $0x38] sm:$0xff]  ;;  %1323 = vadd.xlane.f32.xlu1 %v1322_v24  ;;  %1239 = vadd.xlane.f32.xlu0 %v1238_v27  ;;  %v1122_v18 = vpop.f32.mrf.mxu1  ;;  %v3133_v8 = vadd.f32 %v1060_v13, %v855_v55  ;;  %v586_v55 = vadd.f32 %v2928_v5, %v2669_v47 }
 0x171   :  { %884 = vst.msk [vmem:[%s3749_s6 + $0x48] sm:$0xff] %vm188_vm0, %v856_v30  ;;  %v1156_v32 = vadd.f32 %v1116_v43, %v910_v12  ;;  %v643_v30 = vld [vmem:[%s3749_s6 + $0x78] sm:$0xff] }
 0x172   :  { %v1210_v33 = vld [vmem:[%s3749_s6 + $0x28] sm:$0xff]  ;;  %v1297_v22 = vmul.f32 %v3133_v8, %v3133_v8  ;;  %v647_v5 = vld [vmem:[%s3749_s6 + $0x98] sm:$0xff] }
 0x173   :  { %1184 = vst.msk [vmem:[%s3749_s6 + $0x38] sm:$0xff] %vm188_vm0, %v1156_v32  ;;  %v1294_v31 = vmul.f32 %v1210_v33, %v1210_v33  ;;  %v1241_v34 = vsel %vm188_vm0, %v1210_v33, 0.0 }
 0x174   :  { %v1242_v48 = vadd.f32 %v1241_v34, %v3083_v29 }
 0x175   :  { %v761_v63 = vpop.f32.mrf.mxu2  ;;  %v1325_v38 = vsel %vm188_vm0, %v1294_v31, 0.0 }
 0x176   :  { %v820_v43 = vpop.f32.mrf.mxu3  ;;  %v1326_v45 = vadd.f32 %v1325_v38, %v1293_v57  ;;  %v857_v20 = vadd.f32 %v761_v63, %v2897_v50 }
 0x177   :  { %v858_v42 = vadd.f32 %v820_v43, %v639_v41  ;;  %v1066_v6 = vpop.f32.mrf.mxu0 }
 0x178   :  { %v912_v28 = vld [vmem:[%s3749_s6 + $0x48] sm:$0xff]  ;;  %1327 = vadd.xlane.f32.xlu2 %v1326_v45  ;;  %1243 = vadd.xlane.f32.xlu1 %v1242_v48  ;;  %v1125_v39 = vpop.f32.mrf.mxu1  ;;  %v3158_v31 = vadd.f32 %v1063_v7, %v857_v20  ;;  %v588_v20 = vadd.f32 %v2943_v19, %v2697_v56 }
 0x179   :  { %886 = vst.msk [vmem:[%s3749_s6 + $0x58] sm:$0xff] %vm188_vm0, %v858_v42  ;;  %v1158_v52 = vadd.f32 %v1119_v49, %v912_v28  ;;  %v645_v42 = vld [vmem:[%s3749_s6 + $0x88] sm:$0xff] }
 0x17a   :  { %v1212_v21 = vld [vmem:[%s3749_s6 + $0x38] sm:$0xff]  ;;  %v1299_v43 = vmul.f32 %v3158_v31, %v3158_v31  ;;  %v649_v19 = vld [vmem:[%s3749_s6 + $0xa8] sm:$0xff] }
 0x17b   :  { %1186 = vst.msk [vmem:[%s3749_s6 + $0x48] sm:$0xff] %vm188_vm0, %v1158_v52  ;;  %v1296_v44 = vmul.f32 %v1212_v21, %v1212_v21  ;;  %v1245_v54 = vsel %vm188_vm0, %v1212_v21, 0.0 }
 0x17c   :  { %v1246_v26 = vadd.f32 %v1245_v54, %v3108_v53 }
 0x17d   :  { %v764_v51 = vpop.f32.mrf.mxu2  ;;  %v1329_v61 = vsel %vm188_vm0, %v1296_v44, 0.0 }
 0x17e   :  { %v823_v62 = vpop.f32.mrf.mxu3  ;;  %v1330_v49 = vadd.f32 %v1329_v61, %v1295_v58  ;;  %v859_v7 = vadd.f32 %v764_v51, %v2913_v60 }
 0x17f   :  { %v860_v3 = vadd.f32 %v823_v62, %v641_v1  ;;  %v1069_v36 = vpop.f32.mrf.mxu0 }
 0x180   :  { %v914_v37 = vld [vmem:[%s3749_s6 + $0x58] sm:$0xff]  ;;  %1331 = vadd.xlane.f32.xlu0 %v1330_v49  ;;  %1247 = vadd.xlane.f32.xlu2 %v1246_v26  ;;  %v1128_v16 = vpop.f32.mrf.mxu1  ;;  %v3183_v44 = vadd.f32 %v1066_v6, %v859_v7  ;;  %v590_v7 = vadd.f32 %v2958_v4, %v2725_v2 }
 0x181   :  { %888 = vst.msk [vmem:[%s3749_s6 + $0x68] sm:$0xff] %vm188_vm0, %v860_v3  ;;  %v1160_v14 = vadd.f32 %v1122_v18, %v914_v37  ;;  %v651_v4 = vld [vmem:[%s3749_s6 + $0xb8] sm:$0xff] }
 0x182   :  { %v1214_v25 = vld [vmem:[%s3749_s6 + $0x48] sm:$0xff]  ;;  %v1301_v26 = vmul.f32 %v3183_v44, %v3183_v44 }
 0x183   :  { %1188 = vst.msk [vmem:[%s3749_s6 + $0x58] sm:$0xff] %vm188_vm0, %v1160_v14  ;;  %v1298_v13 = vmul.f32 %v1214_v25, %v1214_v25  ;;  %v1249_v59 = vsel %vm188_vm0, %v1214_v25, 0.0 }
 0x184   :  { %v1250_v32 = vadd.f32 %v1249_v59, %v3133_v8 }
 0x185   :  { %v767_v24 = vpop.f32.mrf.mxu2  ;;  %v1333_v27 = vsel %vm188_vm0, %v1298_v13, 0.0 }
 0x186   :  { %v826_v12 = vpop.f32.mrf.mxu3  ;;  %v1334_v18 = vadd.f32 %v1333_v27, %v1297_v22  ;;  %v861_v62 = vadd.f32 %v767_v24, %v586_v55 }
 0x187   :  { %v862_v33 = vadd.f32 %v826_v12, %v643_v30  ;;  %v1072_v61 = vpop.f32.mrf.mxu0 }
 0x188   :  { %v916_v50 = vld [vmem:[%s3749_s6 + $0x68] sm:$0xff]  ;;  %1335 = vadd.xlane.f32.xlu1 %v1334_v18  ;;  %1251 = vadd.xlane.f32.xlu2 %v1250_v32  ;;  %v1131_v45 = vpop.f32.mrf.mxu1  ;;  %v3209_v25 = vadd.f32 %v1069_v36, %v861_v62 }
 0x189   :  { %890 = vst.msk [vmem:[%s3749_s6 + $0x78] sm:$0xff] %vm188_vm0, %v862_v33  ;;  %v1162_v34 = vadd.f32 %v1125_v39, %v916_v50 }
 0x18a   :  { %v1216_v57 = vld [vmem:[%s3749_s6 + $0x58] sm:$0xff]  ;;  %v1303_v18 = vmul.f32 %v3209_v25, %v3209_v25 }
 0x18b   :  { %1190 = vst.msk [vmem:[%s3749_s6 + $0x68] sm:$0xff] %vm188_vm0, %v1162_v34  ;;  %v1253_v63 = vsel %vm188_vm0, %v1216_v57, 0.0  ;;  %v1300_v38 = vmul.f32 %v1216_v57, %v1216_v57 }
 0x18c   :  { %v1254_v41 = vadd.f32 %v1253_v63, %v3158_v31 }
 0x18d   :  { %v1337_v48 = vsel %vm188_vm0, %v1300_v38, 0.0  ;;  %v770_v52 = vpop.f32.mrf.mxu2 }
 0x18e   :  { %v829_v28 = vpop.f32.mrf.mxu3  ;;  %1255 = vadd.xlane.f32.xlu0 %v1254_v41  ;;  %v1338_v39 = vadd.f32 %v1337_v48, %v1299_v43  ;;  %v863_v30 = vadd.f32 %v770_v52, %v588_v20 }
 0x18f   :  { %v864_v21 = vadd.f32 %v829_v28, %v645_v42  ;;  %v1075_v32 = vpop.f32.mrf.mxu0 }
 0x190   :  { %v918_v60 = vld [vmem:[%s3749_s6 + $0x78] sm:$0xff]  ;;  %1339 = vadd.xlane.f32.xlu2 %v1338_v39  ;;  %v1134_v37 = vpop.f32.mrf.mxu1  ;;  %v3235_v36 = vadd.f32 %v1072_v61, %v863_v30  ;;  %v592_v61 = vadd.f32 %v2973_v40, %v2743_v9 }
 0x191   :  { %892 = vst.msk [vmem:[%s3749_s6 + $0x88] sm:$0xff] %vm188_vm0, %v864_v21  ;;  %v1164_v54 = vadd.f32 %v1128_v16, %v918_v60 }
 0x192   :  { %v1218_v58 = vld [vmem:[%s3749_s6 + $0x68] sm:$0xff]  ;;  %v1305_v39 = vmul.f32 %v3235_v36, %v3235_v36 }
 0x193   :  { %1192 = vst.msk [vmem:[%s3749_s6 + $0x78] sm:$0xff] %vm188_vm0, %v1164_v54  ;;  %v1257_v51 = vsel %vm188_vm0, %v1218_v58, 0.0  ;;  %v1302_v1 = vmul.f32 %v1218_v58, %v1218_v58 }
 0x194   :  { %v1258_v49 = vadd.f32 %v1257_v51, %v3183_v44 }
 0x195   :  { %v1341_v47 = vsel %vm188_vm0, %v1302_v1, 0.0  ;;  %v773_v13 = vpop.f32.mrf.mxu2 }
 0x196   :  { %v832_v3 = vpop.f32.mrf.mxu3  ;;  %1259 = vadd.xlane.f32.xlu1 %v1258_v49  ;;  %v1342_v6 = vadd.f32 %v1341_v47, %v1301_v26  ;;  %v865_v42 = vadd.f32 %v773_v13, %v590_v7 }
 0x197   :  { %v866_v14 = vadd.f32 %v832_v3, %v647_v5  ;;  %v1078_v54 = vpop.f32.mrf.mxu0 }
 0x198   :  { %v920_v16 = vld [vmem:[%s3749_s6 + $0x88] sm:$0xff]  ;;  %1343 = vadd.xlane.f32.xlu0 %v1342_v6  ;;  %v1137_v63 = vpop.f32.mrf.mxu1  ;;  %v3261_v55 = vadd.f32 %v1075_v32, %v865_v42 }
 0x199   :  { %894 = vst.msk [vmem:[%s3749_s6 + $0x98] sm:$0xff] %vm188_vm0, %v866_v14  ;;  %v1166_v59 = vadd.f32 %v1131_v45, %v920_v16  ;;  %v653_v6 = vld [vmem:[%s3749_s6 + $0xc8] sm:$0xff] }
 0x19a   :  { %v1220_v22 = vld [vmem:[%s3749_s6 + $0x78] sm:$0xff]  ;;  %v1307_v3 = vmul.f32 %v3261_v55, %v3261_v55 }
 0x19b   :  { %1194 = vst.msk [vmem:[%s3749_s6 + $0x88] sm:$0xff] %vm188_vm0, %v1166_v59  ;;  %v1261_v24 = vsel %vm188_vm0, %v1220_v22, 0.0  ;;  %v1304_v27 = vmul.f32 %v1220_v22, %v1220_v22 }
 0x19c   :  { %v1262_v12 = vadd.f32 %v1261_v24, %v3209_v25  ;;  %v594_v24 = vadd.f32 %v2988_v15, %v2761_v17 }
 0x19d   :  { %v1345_v56 = vsel %vm188_vm0, %v1304_v27, 0.0  ;;  %v776_v43 = vpop.f32.mrf.mxu2 }
 0x19e   :  { %v835_v33 = vpop.f32.mrf.mxu3  ;;  %1263 = vadd.xlane.f32.xlu2 %v1262_v12  ;;  %v1346_v50 = vadd.f32 %v1345_v56, %v1303_v18  ;;  %v867_v47 = vadd.f32 %v776_v43, %v592_v61 }
 0x19f   :  { %v868_v34 = vadd.f32 %v835_v33, %v649_v19  ;;  %v1081_v20 = vpop.f32.mrf.mxu0  ;;  %v655_v19 = vld [vmem:[%s3749_s6 + $0xd8] sm:$0xff] }
 0x1a0   :  { %v922_v57 = vld [vmem:[%s3749_s6 + $0x98] sm:$0xff]  ;;  %1347 = vadd.xlane.f32.xlu1 %v1346_v50  ;;  %v1140_v62 = vpop.f32.mrf.mxu1  ;;  %v3287_v13 = vadd.f32 %v1078_v54, %v867_v47 }
 0x1a1   :  { %896 = vst.msk [vmem:[%s3749_s6 + $0xa8] sm:$0xff] %vm188_vm0, %v868_v34  ;;  %v1168_v38 = vadd.f32 %v1134_v37, %v922_v57 }
 0x1a2   :  { %v1222_v41 = vld [vmem:[%s3749_s6 + $0x88] sm:$0xff]  ;;  %v1309_v15 = vmul.f32 %v3287_v13, %v3287_v13 }
 0x1a3   :  { %1196 = vst.msk [vmem:[%s3749_s6 + $0x98] sm:$0xff] %vm188_vm0, %v1168_v38  ;;  %v1265_v45 = vsel %vm188_vm0, %v1222_v41, 0.0  ;;  %v1306_v48 = vmul.f32 %v1222_v41, %v1222_v41  ;;  %v596_v41 = vadd.f32 %v2997_v0, %v2779_v23 }
 0x1a4   :  { %v1266_v28 = vadd.f32 %v1265_v45, %v3235_v36 }
 0x1a5   :  { %v1349_v2 = vsel %vm188_vm0, %v1306_v48, 0.0  ;;  %v779_v9 = vpop.f32.mrf.mxu2 }
 0x1a6   :  { %v838_v52 = vpop.f32.mrf.mxu3  ;;  %1267 = vadd.xlane.f32.xlu0 %v1266_v28  ;;  %v1350_v21 = vadd.f32 %v1349_v2, %v1305_v39  ;;  %v869_v18 = vadd.f32 %v779_v9, %v594_v24 }
 0x1a7   :  { %v870_v60 = vadd.f32 %v838_v52, %v651_v4  ;;  %v1084_v45 = vpop.f32.mrf.mxu0 }
 0x1a8   :  { %v924_v58 = vld [vmem:[%s3749_s6 + $0xa8] sm:$0xff]  ;;  %1351 = vadd.xlane.f32.xlu2 %v1350_v21  ;;  %v1143_v17 = vpop.f32.mrf.mxu1 }
 0x1a9   :  { %898 = vst.msk [vmem:[%s3749_s6 + $0xb8] sm:$0xff] %vm188_vm0, %v870_v60  ;;  %v1170_v51 = vadd.f32 %v1137_v63, %v924_v58  ;;  %v3318_v63 = vadd.f32 %v1081_v20, %v869_v18  ;;  %v598_v58 = vadd.f32 %v3006_v10, %v2797_v46 }
 0x1aa   :  { %v1224_v1 = vld [vmem:[%s3749_s6 + $0x98] sm:$0xff] }
 0x1ab   :  { %1198 = vst.msk [vmem:[%s3749_s6 + $0xa8] sm:$0xff] %vm188_vm0, %v1170_v51  ;;  %v1269_v49 = vsel %vm188_vm0, %v1224_v1, 0.0  ;;  %v1308_v26 = vmul.f32 %v1224_v1, %v1224_v1  ;;  %v1311_v2 = vmul.f32 %v3318_v63, %v3318_v63 }
 0x1ac   :  { %v1270_v5 = vadd.f32 %v1269_v49, %v3261_v55 }
 0x1ad   :  { %v1353_v40 = vsel %vm188_vm0, %v1308_v26, 0.0  ;;  %v782_v34 = vpop.f32.mrf.mxu2 }
 0x1ae   :  { %v841_v37 = vpop.f32.mrf.mxu3  ;;  %1271 = vadd.xlane.f32.xlu1 %v1270_v5  ;;  %v1354_v14 = vadd.f32 %v1353_v40, %v1307_v3  ;;  %v871_v28 = vadd.f32 %v782_v34, %v596_v41 }
 0x1af   :  { %v872_v16 = vadd.f32 %v841_v37, %v653_v6  ;;  %v1087_v10 = vpop.f32.mrf.mxu0 }
 0x1b0   :  { %v926_v59 = vld [vmem:[%s3749_s6 + $0xb8] sm:$0xff]  ;;  %1355 = vadd.xlane.f32.xlu0 %v1354_v14  ;;  %v1146_v0 = vpop.f32.mrf.mxu1  ;;  %v3341_v52 = vadd.f32 %v1084_v45, %v871_v28 }
 0x1b1   :  { %900 = vst.msk [vmem:[%s3749_s6 + $0xc8] sm:$0xff] %vm188_vm0, %v872_v16  ;;  %v1172_v22 = vadd.f32 %v1140_v62, %v926_v59  ;;  %v2061_v59 = vmov 0  }
 0x1b2   :  { %v3301_v27 = vld [vmem:[%s3749_s6 + $0xa8] sm:$0xff]  ;;  %v1313_v46 = vmul.f32 %v3341_v52, %v3341_v52  ;;  %2015 = vset.pattern.permute.xlu1 %v2061_v59  ;;  %2016 = vset.pattern.permute.xlu0 %v2061_v59 }
 0x1b3   :  { %1200 = vst.msk [vmem:[%s3749_s6 + $0xb8] sm:$0xff] %vm188_vm0, %v1172_v22  ;;  %v1273_v30 = vsel %vm188_vm0, %v3301_v27, 0.0  ;;  %v1310_v12 = vmul.f32 %v3301_v27, %v3301_v27  ;;  %2017 = vset.pattern.permute.xlu2 %v2061_v59 }
 0x1b4   :  { %v1274_v32 = vadd.f32 %v1273_v30, %v3287_v13 }
 0x1b5   :  { %v1357_v56 = vsel %vm188_vm0, %v1310_v12, 0.0  ;;  %v785_v60 = vpop.f32.mrf.mxu2 }
 0x1b6   :  { %v844_v33 = vpop.f32.mrf.mxu3  ;;  %1275 = vadd.xlane.f32.xlu2 %v1274_v32  ;;  %v1358_v50 = vadd.f32 %v1357_v56, %v1309_v15  ;;  %v873_v62 = vadd.f32 %v785_v60, %v598_v58 }
 0x1b7   :  { %v874_v57 = vadd.f32 %v844_v33, %v655_v19 }
 0x1b8   :  { %v928_v38 = vld [vmem:[%s3749_s6 + $0xc8] sm:$0xff]  ;;  %1359 = vadd.xlane.f32.xlu1 %v1358_v50  ;;  %v3365_v5 = vadd.f32 %v1087_v10, %v873_v62 }
 0x1b9   :  { %902 = vst.msk [vmem:[%s3749_s6 + $0xd8] sm:$0xff] %vm188_vm0, %v874_v57  ;;  %v1174_v7 = vadd.f32 %v1143_v17, %v928_v38 }
 0x1ba   :  { %v1228_v43 = vld [vmem:[%s3749_s6 + $0xb8] sm:$0xff]  ;;  %v1315_v37 = vmul.f32 %v3365_v5, %v3365_v5 }
 0x1bb   :  { %1202 = vst.msk [vmem:[%s3749_s6 + $0xc8] sm:$0xff] %vm188_vm0, %v1174_v7  ;;  %v1277_v48 = vsel %vm188_vm0, %v1228_v43, 0.0  ;;  %v1312_v42 = vmul.f32 %v1228_v43, %v1228_v43 }
 0x1bc   :  { %v1278_v39 = vadd.f32 %v1277_v48, %v3318_v63 }
 0x1bd   :  { %v1361_v23 = vsel %vm188_vm0, %v1312_v42, 0.0 }
 0x1be   :  { %1279 = vadd.xlane.f32.xlu0 %v1278_v39  ;;  %v1362_v4 = vadd.f32 %v1361_v23, %v1311_v2 }
 0x1c0   :  { %v930_v21 = vld [vmem:[%s3749_s6 + $0xd8] sm:$0xff]  ;;  %1363 = vadd.xlane.f32.xlu2 %v1362_v4 }
 0x1c1   :  { %v1176_v54 = vadd.f32 %v1146_v0, %v930_v21  ;;  %v3391_v21 = vld [vmem:[%s3750_s5] sm:$0xff] }
 0x1c2   :  { %v3351_v51 = vld [vmem:[%s3749_s6 + $0xc8] sm:$0xff] }
 0x1c3   :  { %1204 = vst.msk [vmem:[%s3749_s6 + $0xd8] sm:$0xff] %vm188_vm0, %v1176_v54  ;;  %v1281_v61 = vsel %vm188_vm0, %v3351_v51, 0.0  ;;  %v1314_v1 = vmul.f32 %v3351_v51, %v3351_v51 }
 0x1c4   :  { %v1282_v49 = vadd.f32 %v1281_v61, %v3341_v52 }
 0x1c5   :  { %v1365_v26 = vsel %vm188_vm0, %v1314_v1, 0.0 }
 0x1c6   :  { %1283 = vadd.xlane.f32.xlu1 %v1282_v49  ;;  %v1366_v47 = vadd.f32 %v1365_v26, %v1313_v46 }
 0x1c8   :  { %1367 = vadd.xlane.f32.xlu0 %v1366_v47 }
 0x1ca   :  { %v3370_v3 = vld [vmem:[%s3749_s6 + $0xd8] sm:$0xff] }
 0x1cb   :  { %v1285_v9 = vsel %vm188_vm0, %v3370_v3, 0.0  ;;  %v1316_v40 = vmul.f32 %v3370_v3, %v3370_v3 }
 0x1cc   :  { %v1286_v6 = vadd.f32 %v1285_v9, %v3365_v5 }
 0x1cd   :  { %v1369_v14 = vsel %vm188_vm0, %v1316_v40, 0.0 }
 0x1ce   :  { %1287 = vadd.xlane.f32.xlu2 %v1286_v6  ;;  %v1370_v16 = vadd.f32 %v1369_v14, %v1315_v37  ;;  %v3402_v14 = vld [vmem:[%s3750_s5 + $0x8] sm:$0xff] }
 0x1d0   :  { %1371 = vadd.xlane.f32.xlu1 %v1370_v16 }
 0x1d9   :  { %v1236_v20 = vpop.xlane.xlu2 %1235 }
 0x1da   :  { %v1373_v22 = vmul.f32 0.0051020407, %v1236_v20 }
 0x1db   :  { %v1320_v24 = vpop.xlane.xlu0 %1319 }
 0x1dc   :  { %v1401_v30 = vmul.f32 %v1373_v22, %v1373_v22  ;;  %v1387_v12 = vmul.f32 0.0051020407, %v1320_v24 }
 0x1de   :  { %v1415_v18 = vsub.f32 %v1387_v12, %v1401_v30 }
 0x1e0   :  { %v1429_v32 = vadd.f32 0.001, %v1415_v18 }
 0x1e2   :  { %2021 = vrsqrt.f32 %v1429_v32  ;;  %vm1449_vm3 = vweird.f32 %v1429_v32 }
 0x1e3   :  { %v1324_v17 = vpop.xlane.xlu1 %1323  ;;  %v1240_v15 = vpop.xlane.xlu0 %1239 }
 0x1e4   :  { %v3380_v56 = vmul.f32 0.0051020407, %v1240_v15  ;;  %v1388_v19 = vmul.f32 0.0051020407, %v1324_v17 }
 0x1e6   :  { %v1402_v33 = vmul.f32 %v3380_v56, %v3380_v56 }
 0x1e8   :  { %v2022_v50 = vpop.eup %2021  ;;  %v1416_v34 = vsub.f32 %v1388_v19, %v1402_v33 }
 0x1e9   :  { %v1444_v57 = vmul.f32 %v2022_v50, %v1429_v32  ;;  %vm1450_vm2 = vweird.f32 %v2022_v50 }
 0x1ea   :  { %v1430_v38 = vadd.f32 0.001, %v1416_v34  ;;  %vm1451_vm4 = vmor %vm1449_vm3, %vm1450_vm2 }
 0x1eb   :  { %v1445_v7 = vmul.f32 %v2022_v50, %v1444_v57  ;;  %v1328_v41 = vpop.xlane.xlu2 %1327  ;;  %v1244_v43 = vpop.xlane.xlu1 %1243 }
 0x1ec   :  { %2023 = vrsqrt.f32 %v1430_v38  ;;  %v3384_v45 = vmul.f32 0.0051020407, %v1244_v43  ;;  %v1389_v42 = vmul.f32 0.0051020407, %v1328_v41  ;;  %vm1459_vm6 = vweird.f32 %v1430_v38 }
 0x1ed   :  { %v1446_v48 = vmul.f32 0.5, %v1445_v7  ;;  %v3414_v7 = vld [vmem:[%s3750_s5 + $0x10] sm:$0xff] }
 0x1ee   :  { %v1403_v28 = vmul.f32 %v3384_v45, %v3384_v45 }
 0x1ef   :  { %v1447_v39 = vsub.f32 1.5, %v1446_v48 }
 0x1f0   :  { %v1417_v2 = vsub.f32 %v1389_v42, %v1403_v28 }
 0x1f1   :  { %v1448_v23 = vmul.f32 %v2022_v50, %v1447_v39 }
 0x1f2   :  { %v2024_v0 = vpop.eup %2023  ;;  %v1431_v4 = vadd.f32 0.001, %v1417_v2 }
 0x1f3   :  { %v1454_v60 = vmul.f32 %v2024_v0, %v1430_v38  ;;  %v1332_v54 = vpop.xlane.xlu0 %1331  ;;  %v1248_v58 = vpop.xlane.xlu2 %1247  ;;  %v1452_v61 = vsel %vm1451_vm4, %v2022_v50, %v1448_v23  ;;  %vm1460_vm5 = vweird.f32 %v2024_v0 }
 0x1f4   :  { %2025 = vrsqrt.f32 %v1431_v4  ;;  %v3393_v1 = vmul.f32 0.0051020407, %v1248_v58  ;;  %v1597_v49 = vmul.f32 %v3391_v21, %v1452_v61  ;;  %v1390_v46 = vmul.f32 0.0051020407, %v1332_v54  ;;  %vm1461_vm7 = vmor %vm1459_vm6, %vm1460_vm5 }
 0x1f5   :  { %v1455_v62 = vmul.f32 %v2024_v0, %v1454_v60  ;;  %vm1469_vm9 = vweird.f32 %v1431_v4 }
 0x1f6   :  { %v1404_v10 = vmul.f32 %v3393_v1, %v3393_v1  ;;  %1697 = vperm.xlu1 %2015, %v1597_v49   ;;  %v1611_v47 = vmul.f32 %v1597_v49, %v1373_v22 }
 0x1f7   :  { %v1456_v26 = vmul.f32 0.5, %v1455_v62 }
 0x1f8   :  { %v1418_v9 = vsub.f32 %v1390_v46, %v1404_v10  ;;  %1639 = vrot.lane.b32.xlu2 %v1611_v47, %s2062_s10 }
 0x1f9   :  { %v1457_v40 = vsub.f32 1.5, %v1456_v26 }
 0x1fa   :  { %v2026_v6 = vpop.eup %2025  ;;  %v1432_v37 = vadd.f32 0.001, %v1418_v9 }
 0x1fb   :  { %v1458_v16 = vmul.f32 %v2024_v0, %v1457_v40  ;;  %v1464_v59 = vmul.f32 %v2026_v6, %v1431_v4  ;;  %v1336_v20 = vpop.xlane.xlu1 %1335  ;;  %v1252_v24 = vpop.xlane.xlu2 %1251  ;;  %vm1470_vm8 = vweird.f32 %v2026_v6 }
 0x1fc   :  { %2027 = vrsqrt.f32 %v1432_v37  ;;  %v3404_v22 = vmul.f32 0.0051020407, %v1252_v24  ;;  %v1391_v32 = vmul.f32 0.0051020407, %v1336_v20  ;;  %vm1471_vm10 = vmor %vm1469_vm9, %vm1470_vm8  ;;  %vm1479_vm12 = vweird.f32 %v1432_v37 }
 0x1fd   :  { %v1462_v30 = vsel %vm1461_vm7, %v2024_v0, %v1458_v16  ;;  %v1465_v12 = vmul.f32 %v2026_v6, %v1464_v59 }
 0x1fe   :  { %v1598_v18 = vmul.f32 %v3402_v14, %v1462_v30  ;;  %v1405_v17 = vmul.f32 %v3404_v22, %v3404_v22 }
 0x1ff   :  { %v1466_v15 = vmul.f32 0.5, %v1465_v12 }
 0x200   :  { %v1419_v19 = vsub.f32 %v1391_v32, %v1405_v17  ;;  %1702 = vperm.xlu0 %2016, %v1598_v18   ;;  %v1612_v23 = vmul.f32 %v1598_v18, %v3380_v56  ;;  %v3428_v56 = vld [vmem:[%s3750_s5 + $0x18] sm:$0xff] }
 0x201   :  { %v1467_v33 = vsub.f32 1.5, %v1466_v15  ;;  %v1256_v50 = vpop.xlane.xlu0 %1255  ;;  %v3440_v15 = vld [vmem:[%s3750_s5 + $0x20] sm:$0xff] }
 0x202   :  { %v2028_v34 = vpop.eup %2027  ;;  %v1433_v57 = vadd.f32 0.001, %v1419_v19  ;;  %v3409_v38 = vmul.f32 0.0051020407, %v1256_v50 }
 0x203   :  { %v1468_v41 = vmul.f32 %v2026_v6, %v1467_v33  ;;  %v1474_v43 = vmul.f32 %v2028_v34, %v1432_v37  ;;  %v1340_v48 = vpop.xlane.xlu2 %1339  ;;  %vm1480_vm11 = vweird.f32 %v2028_v34 }
 0x204   :  { %2029 = vrsqrt.f32 %v1433_v57  ;;  %v1406_v42 = vmul.f32 %v3409_v38, %v3409_v38  ;;  %v1392_v28 = vmul.f32 0.0051020407, %v1340_v48  ;;  %vm1481_vm13 = vmor %vm1479_vm12, %vm1480_vm11  ;;  %vm1489_vm15 = vweird.f32 %v1433_v57 }
 0x205   :  { %v1472_v39 = vsel %vm1471_vm10, %v2026_v6, %v1468_v41  ;;  %v1475_v2 = vmul.f32 %v2028_v34, %v1474_v43 }
 0x206   :  { %v1599_v0 = vmul.f32 %v3414_v7, %v1472_v39  ;;  %v1420_v60 = vsub.f32 %v1392_v28, %v1406_v42 }
 0x207   :  { %v1476_v54 = vmul.f32 0.5, %v1475_v2 }
 0x208   :  { %v1613_v58 = vmul.f32 %v1599_v0, %v3384_v45  ;;  %v1434_v61 = vadd.f32 0.001, %v1420_v60  ;;  %1707 = vperm.xlu2 %2017, %v1599_v0   ;;  %1641 = vrot.lane.b32.xlu0 %v1612_v23, %s2062_s10  ;;  %v3448_v60 = vld [vmem:[%s3750_s5 + $0x28] sm:$0xff] }
 0x209   :  { %v1477_v4 = vsub.f32 1.5, %v1476_v54  ;;  %v1260_v62 = vpop.xlane.xlu1 %1259 }
 0x20a   :  { %v2030_v49 = vpop.eup %2029  ;;  %2031 = vrsqrt.f32 %v1434_v61  ;;  %v3422_v46 = vmul.f32 0.0051020407, %v1260_v62  ;;  %1643 = vrot.lane.b32.xlu1 %v1613_v58, %s2062_s10  ;;  %vm1499_vm3 = vweird.f32 %v1434_v61 }
 0x20b   :  { %v1478_v10 = vmul.f32 %v2028_v34, %v1477_v4  ;;  %v1484_v45 = vmul.f32 %v2030_v49, %v1433_v57  ;;  %v1344_v26 = vpop.xlane.xlu0 %1343  ;;  %vm1490_vm14 = vweird.f32 %v2030_v49 }
 0x20c   :  { %v1407_v47 = vmul.f32 %v3422_v46, %v3422_v46  ;;  %v1393_v9 = vmul.f32 0.0051020407, %v1344_v26  ;;  %vm1491_vm1 = vmor %vm1489_vm15, %vm1490_vm14 }
 0x20d   :  { %v1482_v40 = vsel %vm1481_vm13, %v2028_v34, %v1478_v10  ;;  %v1485_v6 = vmul.f32 %v2030_v49, %v1484_v45 }
 0x20e   :  { %v1600_v16 = vmul.f32 %v3428_v56, %v1482_v40  ;;  %v1421_v59 = vsub.f32 %v1393_v9, %v1407_v47 }
 0x20f   :  { %v1486_v20 = vmul.f32 0.5, %v1485_v6 }
 0x210   :  { %v2032_v24 = vpop.eup %2031  ;;  %v1614_v30 = vmul.f32 %v1600_v16, %v3393_v1  ;;  %v1435_v12 = vadd.f32 0.001, %v1421_v59 }
 0x211   :  { %v1487_v18 = vsub.f32 1.5, %v1486_v20  ;;  %v1494_v37 = vmul.f32 %v2032_v24, %v1434_v61  ;;  %v1264_v32 = vpop.xlane.xlu2 %1263  ;;  %vm1500_vm2 = vweird.f32 %v2032_v24 }
 0x212   :  { %2033 = vrsqrt.f32 %v1435_v12  ;;  %v3434_v17 = vmul.f32 0.0051020407, %v1264_v32  ;;  %1645 = vrot.lane.b32.xlu0 %v1614_v30, %s2062_s10  ;;  %1712 = vperm.xlu1 %2015, %v1600_v16   ;;  %vm1501_vm4 = vmor %vm1499_vm3, %vm1500_vm2  ;;  %vm1509_vm6 = vweird.f32 %v1435_v12 }
 0x213   :  { %v1488_v19 = vmul.f32 %v2030_v49, %v1487_v18  ;;  %v1495_v33 = vmul.f32 %v2032_v24, %v1494_v37  ;;  %v1348_v1 = vpop.xlane.xlu1 %1347 }
 0x214   :  { %v1408_v50 = vmul.f32 %v3434_v17, %v3434_v17  ;;  %v1394_v34 = vmul.f32 0.0051020407, %v1348_v1 }
 0x215   :  { %v1492_v41 = vsel %vm1491_vm1, %v2030_v49, %v1488_v19  ;;  %v1496_v43 = vmul.f32 0.5, %v1495_v33 }
 0x216   :  { %v1601_v48 = vmul.f32 %v3440_v15, %v1492_v41  ;;  %v1422_v42 = vsub.f32 %v1394_v34, %v1408_v50 }
 0x217   :  { %v1497_v28 = vsub.f32 1.5, %v1496_v43 }
 0x218   :  { %v2034_v39 = vpop.eup %2033  ;;  %v1436_v2 = vadd.f32 0.001, %v1422_v42  ;;  %1717 = vperm.xlu2 %2017, %v1601_v48   ;;  %v1615_v26 = vmul.f32 %v1601_v48, %v3404_v22 }
 0x219   :  { %v1504_v23 = vmul.f32 %v2034_v39, %v1435_v12  ;;  %v1268_v57 = vpop.xlane.xlu0 %1267  ;;  %v1498_v0 = vmul.f32 %v2032_v24, %v1497_v28  ;;  %vm1510_vm5 = vweird.f32 %v2034_v39 }
 0x21a   :  { %2035 = vrsqrt.f32 %v1436_v2  ;;  %v3450_v54 = vmul.f32 0.0051020407, %v1268_v57  ;;  %vm1511_vm7 = vmor %vm1509_vm6, %vm1510_vm5  ;;  %vm1519_vm9 = vweird.f32 %v1436_v2 }
 0x21b   :  { %v1505_v58 = vmul.f32 %v2034_v39, %v1504_v23  ;;  %v1352_v4 = vpop.xlane.xlu2 %1351  ;;  %v1502_v62 = vsel %vm1501_vm4, %v2032_v24, %v1498_v0  ;;  %v3460_v24 = vld [vmem:[%s3750_s5 + $0x30] sm:$0xff] }
 0x21c   :  { %v1409_v49 = vmul.f32 %v3450_v54, %v3450_v54  ;;  %v1395_v10 = vmul.f32 0.0051020407, %v1352_v4  ;;  %v1602_v61 = vmul.f32 %v3448_v60, %v1502_v62 }
 0x21d   :  { %v1506_v45 = vmul.f32 0.5, %v1505_v58 }
 0x21e   :  { %v1423_v47 = vsub.f32 %v1395_v10, %v1409_v49  ;;  %1722 = vperm.xlu1 %2015, %v1602_v61   ;;  %v1616_v12 = vmul.f32 %v1602_v61, %v3409_v38 }
 0x21f   :  { %v1507_v9 = vsub.f32 1.5, %v1506_v45 }
 0x220   :  { %v2036_v40 = vpop.eup %2035  ;;  %v1437_v6 = vadd.f32 0.001, %v1423_v47  ;;  %1647 = vrot.lane.b32.xlu2 %v1615_v26, %s2062_s10 }
 0x221   :  { %v1514_v16 = vmul.f32 %v2036_v40, %v1436_v2  ;;  %v1272_v59 = vpop.xlane.xlu1 %1271  ;;  %v1508_v20 = vmul.f32 %v2034_v39, %v1507_v9  ;;  %vm1520_vm8 = vweird.f32 %v2036_v40 }
 0x222   :  { %2037 = vrsqrt.f32 %v1437_v6  ;;  %v3462_v30 = vmul.f32 0.0051020407, %v1272_v59  ;;  %vm1521_vm10 = vmor %vm1519_vm9, %vm1520_vm8  ;;  %vm1529_vm12 = vweird.f32 %v1437_v6 }
 0x223   :  { %v1515_v22 = vmul.f32 %v2036_v40, %v1514_v16  ;;  %v1356_v18 = vpop.xlane.xlu0 %1355  ;;  %v1512_v37 = vsel %vm1511_vm7, %v2034_v39, %v1508_v20  ;;  %v3472_v39 = vld [vmem:[%s3750_s5 + $0x38] sm:$0xff]  ;;  %v3484_v16 = vld [vmem:[%s3750_s5 + $0x40] sm:$0xff] }
 0x224   :  { %v1410_v32 = vmul.f32 %v3462_v30, %v3462_v30  ;;  %v1396_v19 = vmul.f32 0.0051020407, %v1356_v18  ;;  %v1603_v33 = vmul.f32 %v3460_v24, %v1512_v37 }
 0x225   :  { %v1516_v1 = vmul.f32 0.5, %v1515_v22 }
 0x226   :  { %v1424_v50 = vsub.f32 %v1396_v19, %v1410_v32  ;;  %1649 = vrot.lane.b32.xlu1 %v1616_v12, %s2062_s10  ;;  %1727 = vperm.xlu0 %2016, %v1603_v33   ;;  %v1617_v2 = vmul.f32 %v1603_v33, %v3422_v46 }
 0x227   :  { %v1517_v34 = vsub.f32 1.5, %v1516_v1 }
 0x228   :  { %v2038_v41 = vpop.eup %2037  ;;  %v1438_v43 = vadd.f32 0.001, %v1424_v50 }
 0x229   :  { %v1524_v48 = vmul.f32 %v2038_v41, %v1437_v6  ;;  %v1276_v42 = vpop.xlane.xlu2 %1275  ;;  %v1518_v28 = vmul.f32 %v2036_v40, %v1517_v34  ;;  %vm1530_vm11 = vweird.f32 %v2038_v41 }
 0x22a   :  { %2039 = vrsqrt.f32 %v1438_v43  ;;  %v3474_v38 = vmul.f32 0.0051020407, %v1276_v42  ;;  %vm1531_vm13 = vmor %vm1529_vm12, %vm1530_vm11  ;;  %vm1539_vm15 = vweird.f32 %v1438_v43  ;;  %v3496_v42 = vld [vmem:[%s3750_s5 + $0x48] sm:$0xff] }
 0x22b   :  { %v1525_v23 = vmul.f32 %v2038_v41, %v1524_v48  ;;  %v1360_v57 = vpop.xlane.xlu1 %1359  ;;  %v1522_v0 = vsel %vm1521_vm10, %v2036_v40, %v1518_v28 }
 0x22c   :  { %v1411_v58 = vmul.f32 %v3474_v38, %v3474_v38  ;;  %v1397_v4 = vmul.f32 0.0051020407, %v1360_v57  ;;  %v1604_v62 = vmul.f32 %v3472_v39, %v1522_v0 }
 0x22d   :  { %v1526_v49 = vmul.f32 0.5, %v1525_v23 }
 0x22e   :  { %v1425_v10 = vsub.f32 %v1397_v4, %v1411_v58  ;;  %1651 = vrot.lane.b32.xlu0 %v1617_v2, %s2062_s10  ;;  %1732 = vperm.xlu2 %2017, %v1604_v62   ;;  %v1618_v32 = vmul.f32 %v1604_v62, %v3434_v17 }
 0x22f   :  { %v1527_v61 = vsub.f32 1.5, %v1526_v49 }
 0x230   :  { %v2040_v45 = vpop.eup %2039  ;;  %v1439_v26 = vadd.f32 0.001, %v1425_v10 }
 0x231   :  { %v1534_v47 = vmul.f32 %v2040_v45, %v1438_v43  ;;  %v1280_v9 = vpop.xlane.xlu0 %1279  ;;  %v1528_v40 = vmul.f32 %v2038_v41, %v1527_v61  ;;  %vm1540_vm14 = vweird.f32 %v2040_v45 }
 0x232   :  { %2041 = vrsqrt.f32 %v1439_v26  ;;  %v3486_v46 = vmul.f32 0.0051020407, %v1280_v9  ;;  %vm1541_vm1 = vmor %vm1539_vm15, %vm1540_vm14  ;;  %vm1549_vm3 = vweird.f32 %v1439_v26 }
 0x233   :  { %v1535_v59 = vmul.f32 %v2040_v45, %v1534_v47  ;;  %v1364_v20 = vpop.xlane.xlu2 %1363  ;;  %v1532_v22 = vsel %vm1531_vm13, %v2038_v41, %v1528_v40  ;;  %v3508_v40 = vld [vmem:[%s3750_s5 + $0x50] sm:$0xff] }
 0x234   :  { %v1412_v18 = vmul.f32 %v3486_v46, %v3486_v46  ;;  %v1398_v37 = vmul.f32 0.0051020407, %v1364_v20  ;;  %v1605_v6 = vmul.f32 %v3484_v16, %v1532_v22 }
 0x235   :  { %v1536_v19 = vmul.f32 0.5, %v1535_v59 }
 0x236   :  { %v1426_v12 = vsub.f32 %v1398_v37, %v1412_v18  ;;  %1737 = vperm.xlu1 %2015, %v1605_v6   ;;  %1653 = vrot.lane.b32.xlu2 %v1618_v32, %s2062_s10  ;;  %v1619_v43 = vmul.f32 %v1605_v6, %v3450_v54 }
 0x237   :  { %v1537_v33 = vsub.f32 1.5, %v1536_v19 }
 0x238   :  { %v2042_v1 = vpop.eup %2041  ;;  %v1440_v50 = vadd.f32 0.001, %v1426_v12 }
 0x239   :  { %v1544_v34 = vmul.f32 %v2042_v1, %v1439_v26  ;;  %v1284_v41 = vpop.xlane.xlu1 %1283  ;;  %v1538_v48 = vmul.f32 %v2040_v45, %v1537_v33  ;;  %vm1550_vm2 = vweird.f32 %v2042_v1 }
 0x23a   :  { %2043 = vrsqrt.f32 %v1440_v50  ;;  %v3498_v17 = vmul.f32 0.0051020407, %v1284_v41  ;;  %vm1551_vm4 = vmor %vm1549_vm3, %vm1550_vm2  ;;  %vm1559_vm6 = vweird.f32 %v1440_v50 }
 0x23b   :  { %v1545_v28 = vmul.f32 %v2042_v1, %v1544_v34  ;;  %v1368_v23 = vpop.xlane.xlu0 %1367  ;;  %v1542_v57 = vsel %vm1541_vm1, %v2040_v45, %v1538_v48 }
 0x23c   :  { %v1413_v0 = vmul.f32 %v3498_v17, %v3498_v17  ;;  %v1399_v58 = vmul.f32 0.0051020407, %v1368_v23  ;;  %v1606_v4 = vmul.f32 %v3496_v42, %v1542_v57 }
 0x23d   :  { %v1546_v2 = vmul.f32 0.5, %v1545_v28 }
 0x23e   :  { %v1427_v62 = vsub.f32 %v1399_v58, %v1413_v0  ;;  %1655 = vrot.lane.b32.xlu1 %v1619_v43, %s2062_s10  ;;  %1742 = vperm.xlu0 %2016, %v1606_v4   ;;  %v1620_v6 = vmul.f32 %v1606_v4, %v3462_v30 }
 0x23f   :  { %v1547_v49 = vsub.f32 1.5, %v1546_v2 }
 0x240   :  { %v2044_v10 = vpop.eup %2043  ;;  %v1441_v61 = vadd.f32 0.001, %v1427_v62  ;;  %v3526_v62 = vld [vmem:[%s3750_s5 + $0x60] sm:$0xff] }
 0x241   :  { %v1554_v47 = vmul.f32 %v2044_v10, %v1440_v50  ;;  %v1288_v45 = vpop.xlane.xlu2 %1287  ;;  %v1548_v9 = vmul.f32 %v2042_v1, %v1547_v49  ;;  %vm1560_vm5 = vweird.f32 %v2044_v10 }
 0x242   :  { %2045 = vrsqrt.f32 %v1441_v61  ;;  %v1386_v54 = vmul.f32 0.0051020407, %v1288_v45  ;;  %vm1561_vm7 = vmor %vm1559_vm6, %vm1560_vm5  ;;  %vm1569_vm9 = vweird.f32 %v1441_v61 }
 0x243   :  { %v1555_v59 = vmul.f32 %v2044_v10, %v1554_v47  ;;  %v1372_v20 = vpop.xlane.xlu1 %1371  ;;  %v1552_v22 = vsel %vm1551_vm4, %v2042_v1, %v1548_v9  ;;  %v3516_v1 = vld [vmem:[%s3750_s5 + $0x58] sm:$0xff]  ;;  %v1596_v9 = vld [vmem:[%s3750_s5 + $0x68] sm:$0xff] }
 0x244   :  { %v1414_v18 = vmul.f32 %v1386_v54, %v1386_v54  ;;  %v1400_v37 = vmul.f32 0.0051020407, %v1372_v20  ;;  %v1607_v26 = vmul.f32 %v3508_v40, %v1552_v22 }
 0x245   :  { %v1556_v32 = vmul.f32 0.5, %v1555_v59 }
 0x246   :  { %v1428_v19 = vsub.f32 %v1400_v37, %v1414_v18  ;;  %1657 = vrot.lane.b32.xlu0 %v1620_v6, %s2062_s10  ;;  %1747 = vperm.xlu2 %2017, %v1607_v26   ;;  %v1621_v23 = vmul.f32 %v1607_v26, %v3474_v38  ;;  %v2063_v6 = vmov 1  }
 0x247   :  { %v1557_v12 = vsub.f32 1.5, %v1556_v32 }
 0x248   :  { %v2046_v33 = vpop.eup %2045  ;;  %v1442_v34 = vadd.f32 0.001, %v1428_v19 }
 0x249   :  { %v1564_v41 = vmul.f32 %v2046_v33, %v1441_v61  ;;  %v1558_v48 = vmul.f32 %v2044_v10, %v1557_v12  ;;  %vm1570_vm8 = vweird.f32 %v2046_v33 }
 0x24a   :  { %2047 = vrsqrt.f32 %v1442_v34  ;;  %vm1571_vm10 = vmor %vm1569_vm9, %vm1570_vm8  ;;  %vm1579_vm12 = vweird.f32 %v1442_v34 }
 0x24b   :  { %v1565_v30 = vmul.f32 %v2046_v33, %v1564_v41  ;;  %v1562_v28 = vsel %vm1561_vm7, %v2044_v10, %v1558_v48 }
 0x24c   :  { %v1608_v57 = vmul.f32 %v3516_v1, %v1562_v28 }
 0x24d   :  { %v1566_v0 = vmul.f32 0.5, %v1565_v30 }
 0x24e   :  { %1659 = vrot.lane.b32.xlu2 %v1621_v23, %s2062_s10  ;;  %v1622_v50 = vmul.f32 %v1608_v57, %v3486_v46 }
 0x24f   :  { %v1567_v58 = vsub.f32 1.5, %v1566_v0 }
 0x250   :  { %v2048_v43 = vpop.eup %2047  ;;  %1661 = vrot.lane.b32.xlu1 %v1622_v50, %s2062_s10 }
 0x251   :  { %v1574_v4 = vmul.f32 %v2048_v43, %v1442_v34  ;;  %v1568_v2 = vmul.f32 %v2046_v33, %v1567_v58  ;;  %vm1580_vm11 = vweird.f32 %v2048_v43 }
 0x252   :  { %vm1581_vm13 = vmor %vm1579_vm12, %vm1580_vm11  ;;  %v1640_v20 = vpop.permute.xlu2 %1639 }
 0x253   :  { %v1575_v38 = vmul.f32 %v2048_v43, %v1574_v4  ;;  %v1572_v49 = vsel %vm1571_vm10, %v2046_v33, %v1568_v2  ;;  %v1681_v37 = vsub.f32 %v3391_v21, %v1640_v20 }
 0x254   :  { %v1609_v10 = vmul.f32 %v3526_v62, %v1572_v49 }
 0x255   :  { %v1576_v47 = vmul.f32 0.5, %v1575_v38 }
 0x256   :  { %v1623_v46 = vmul.f32 %v1609_v10, %v3498_v17 }
 0x257   :  { %v1577_v45 = vsub.f32 1.5, %v1576_v47 }
 0x258   :  { %1752 = vperm.xlu1 %2015, %v1608_v57   ;;  %1663 = vrot.lane.b32.xlu0 %v1623_v46, %s2062_s10 }
 0x259   :  { %v1578_v61 = vmul.f32 %v2048_v43, %v1577_v45 }
 0x25b   :  { %v1582_v59 = vsel %vm1581_vm13, %v2048_v43, %v1578_v61 }
 0x25c   :  { %v1610_v22 = vmul.f32 %v1596_v9, %v1582_v59 }
 0x25e   :  { %v1624_v18 = vmul.f32 %v1610_v22, %v1386_v54 }
 0x260   :  { %2018 = vset.pattern.permute.xlu1 %v2063_v6  ;;  %1757 = vperm.xlu0 %2016, %v1609_v10  }
 0x261   :  { %1665 = vrot.lane.b32.xlu2 %v1624_v18, %s2062_s10  ;;  %1795 = vperm.xlu1 %2018, %v1681_v37  }
 0x262   :  { %v3536_v17 = vpop.permute.xlu2 %1707 }
 0x268   :  { %2019 = vset.pattern.permute.xlu0 %v2063_v6  ;;  %v1698_v32 = vpop.permute.xlu1 %1697 }
 0x269   :  { %1762 = vperm.xlu2 %2017, %v1610_v22  }
 0x271   :  { %2020 = vset.pattern.permute.xlu2 %v2063_v6 }
 0x272   :  { %v3538_v26 = vpop.permute.xlu0 %1702  ;;  %v3540_v19 = vpop.permute.xlu2 %1717 }
 0x27a   :  { %v1642_v12 = vpop.permute.xlu0 %1641  ;;  %v1648_v34 = vpop.permute.xlu2 %1647 }
 0x27b   :  { %v1682_v54 = vsub.f32 %v3402_v14, %v1642_v12  ;;  %v1685_v48 = vsub.f32 %v3440_v15, %v1648_v34 }
 0x27c   :  { %v1644_v21 = vpop.permute.xlu1 %1643 }
 0x27d   :  { %v1683_v33 = vsub.f32 %v3414_v7, %v1644_v21  ;;  %1800 = vperm.xlu0 %2019, %v1682_v54   ;;  %v2051_v21 = vld [vmem:[%s3749_s6 + $0x48] sm:$0xff] }
 0x27f   :  { %1805 = vperm.xlu2 %2020, %v1683_v33  }
 0x284   :  { %v1646_v41 = vpop.permute.xlu0 %1645  ;;  %v3546_v28 = vpop.permute.xlu1 %1712 }
 0x285   :  { %v1684_v30 = vsub.f32 %v3428_v56, %v1646_v41 }
 0x287   :  { %1810 = vperm.xlu1 %2018, %v1684_v30   ;;  %1815 = vperm.xlu2 %2020, %v1685_v48  }
 0x288   :  { %v1733_v23 = vpop.permute.xlu2 %1732 }
 0x290   :  { %v1654_v57 = vpop.permute.xlu2 %1653  ;;  %v3548_v0 = vpop.permute.xlu1 %1722 }
 0x291   :  { %v1688_v14 = vsub.f32 %v3472_v39, %v1654_v57 }
 0x293   :  { %1830 = vperm.xlu2 %2020, %v1688_v14   ;;  %v1767_v14 = vmul.f32 %v3538_v26, %v3058_v35  ;;  %v1771_v35 = vmul.f32 %v3546_v28, %v3108_v53 }
 0x298   :  { %v3551_v7 = vpop.permute.xlu0 %1727  ;;  %v1650_v50 = vpop.permute.xlu1 %1649 }
 0x299   :  { %v1686_v58 = vsub.f32 %v3448_v60, %v1650_v50  ;;  %v2053_v50 = vld [vmem:[%s3749_s6 + $0x18] sm:$0xff] }
 0x29b   :  { %1820 = vperm.xlu1 %2018, %v1686_v58   ;;  %v1768_v58 = vmul.f32 %v2053_v50, %v3538_v26  ;;  %v2054_v26 = vld [vmem:[%s3749_s6 + $0x38] sm:$0xff] }
 0x2a0   :  { %v1652_v15 = vpop.permute.xlu0 %1651  ;;  %v3554_v43 = vpop.permute.xlu2 %1747 }
 0x2a1   :  { %v1687_v56 = vsub.f32 %v3460_v24, %v1652_v15  ;;  %v1785_v53 = vmul.f32 %v3554_v43, %v3287_v13  ;;  %v2055_v13 = vld [vmem:[%s3749_s6 + $0x58] sm:$0xff] }
 0x2a3   :  { %1825 = vperm.xlu0 %2019, %v1687_v56  }
 0x2a8   :  { %v1660_v4 = vpop.permute.xlu2 %1659  ;;  %v3557_v2 = vpop.permute.xlu1 %1737 }
 0x2a9   :  { %v1691_v38 = vsub.f32 %v3508_v40, %v1660_v4 }
 0x2ab   :  { %1845 = vperm.xlu2 %2020, %v1691_v38  }
 0x2b0   :  { %v3560_v39 = vpop.permute.xlu0 %1742  ;;  %v1656_v49 = vpop.permute.xlu1 %1655 }
 0x2b1   :  { %v1689_v10 = vsub.f32 %v3484_v16, %v1656_v49  ;;  %v1765_v16 = vmul.f32 %v1698_v32, %v3033_v11  ;;  %v1769_v11 = vmul.f32 %v3536_v17, %v3083_v29  ;;  %v1773_v29 = vmul.f32 %v3540_v19, %v3133_v8 }
 0x2b2   :  { %v1779_v8 = vmul.f32 %v1733_v23, %v3209_v25 }
 0x2b3   :  { %1835 = vperm.xlu1 %2018, %v1689_v10  }
 0x2b8   :  { %v1658_v60 = vpop.permute.xlu0 %1657 }
 0x2b9   :  { %v1690_v47 = vsub.f32 %v3496_v42, %v1658_v60  ;;  %v2049_v42 = vld [vmem:[%s3749_s6 + $0x8] sm:$0xff] }
 0x2bb   :  { %v1666_v46 = vpop.permute.xlu2 %1665  ;;  %1840 = vperm.xlu0 %2019, %v1690_v47   ;;  %v1786_v47 = vmul.f32 %v3554_v43, %v3301_v27  ;;  %v1776_v27 = vmul.f32 %v2055_v13, %v3548_v0 }
 0x2bc   :  { %v1694_v45 = vsub.f32 %v1596_v9, %v1666_v46  ;;  %v1766_v9 = vmul.f32 %v2049_v42, %v1698_v32 }
 0x2be   :  { %1860 = vperm.xlu2 %2020, %v1694_v45  }
 0x2c2   :  { %v1662_v24 = vpop.permute.xlu1 %1661 }
 0x2c3   :  { %v1692_v61 = vsub.f32 %v3516_v1, %v1662_v24  ;;  %v3568_v22 = vpop.permute.xlu2 %1762  ;;  %v2050_v1 = vld [vmem:[%s3749_s6 + $0x28] sm:$0xff]  ;;  %v1775_v24 = vmul.f32 %v3548_v0, %v3158_v31  ;;  %v1777_v31 = vmul.f32 %v3551_v7, %v3183_v44 }
 0x2c5   :  { %1850 = vperm.xlu1 %2018, %v1692_v61  }
 0x2ca   :  { %v1664_v59 = vpop.permute.xlu0 %1663  ;;  %v3565_v40 = vpop.permute.xlu1 %1752 }
 0x2cb   :  { %v1693_v20 = vsub.f32 %v3526_v62, %v1664_v59  ;;  %v1770_v62 = vmul.f32 %v2050_v1, %v3536_v17  ;;  %v1774_v17 = vmul.f32 %v2051_v21, %v3540_v19  ;;  %v2052_v19 = vld [vmem:[%s3749_s6 + $0x78] sm:$0xff] }
 0x2cc   :  { %v1780_v30 = vmul.f32 %v2052_v19, %v1733_v23  ;;  %v1772_v23 = vmul.f32 %v2054_v26, %v3546_v28  ;;  %v2059_v21 = vld [vmem:[%s3749_s6 + $0xb8] sm:$0xff] }
 0x2cd   :  { %1855 = vperm.xlu0 %2019, %v1693_v20   ;;  %v2056_v20 = vld [vmem:[%s3749_s6 + $0x68] sm:$0xff] }
 0x2ce   :  { %v1778_v0 = vmul.f32 %v2056_v20, %v3551_v7 }
 0x2d2   :  { %v3607_v48 = vpop.permute.xlu0 %1757 }
 0x2d3   :  { %v1796_v18 = vpop.permute.xlu1 %1795 }
 0x2d4   :  { %v1863_v37 = vadd.f32 %v1796_v18, %v1765_v16  ;;  %v1864_v6 = vadd.f32 %v1796_v18, %v1766_v9  ;;  %v1791_v18 = vmul.f32 %v3568_v22, %v3365_v5  ;;  %v1781_v5 = vmul.f32 %v3557_v2, %v3235_v36 }
 0x2d5   :  { %v1783_v36 = vmul.f32 %v3560_v39, %v3261_v55  ;;  %v1787_v55 = vmul.f32 %v3565_v40, %v3318_v63  ;;  %v1789_v63 = vmul.f32 %v3607_v48, %v3341_v52 }
 0x2d6   :  { %1891 = vst [vmem:[%s3749_s6] sm:$0xff] %v1863_v37  ;;  %v1792_v37 = vmul.f32 %v3568_v22, %v3370_v3  ;;  %v2057_v3 = vld [vmem:[%s3749_s6 + $0x88] sm:$0xff] }
 0x2d7   :  { %1892 = vst.msk [vmem:[%s3749_s6 + $0x8] sm:$0xff] %vm188_vm0, %v1864_v6  ;;  %v1782_v22 = vmul.f32 %v2057_v3, %v3557_v2 }
 0x2d9   :  { %v1806_v32 = vpop.permute.xlu2 %1805 }
 0x2da   :  { %v1867_v12 = vadd.f32 %v1806_v32, %v1769_v11  ;;  %v1868_v54 = vadd.f32 %v1806_v32, %v1770_v62  ;;  %v2058_v32 = vld [vmem:[%s3749_s6 + $0x98] sm:$0xff] }
 0x2db   :  { %v1784_v2 = vmul.f32 %v2058_v32, %v3560_v39  ;;  %v1788_v39 = vmul.f32 %v2059_v21, %v3565_v40 }
 0x2dc   :  { %1895 = vst [vmem:[%s3749_s6 + $0x20] sm:$0xff] %v1867_v12 }
 0x2dd   :  { %1896 = vst.msk [vmem:[%s3749_s6 + $0x28] sm:$0xff] %vm188_vm0, %v1868_v54 }
 0x2e1   :  { %v1816_v33 = vpop.permute.xlu2 %1815 }
 0x2e2   :  { %v1871_v34 = vadd.f32 %v1816_v33, %v1773_v29  ;;  %v1872_v41 = vadd.f32 %v1816_v33, %v1774_v17 }
 0x2e4   :  { %1899 = vst [vmem:[%s3749_s6 + $0x40] sm:$0xff] %v1871_v34 }
 0x2e5   :  { %1900 = vst.msk [vmem:[%s3749_s6 + $0x48] sm:$0xff] %vm188_vm0, %v1872_v41  ;;  %v1790_v41 = vmul.f32 %v3607_v48, %v3351_v51 }
 0x2ed   :  { %v1831_v57 = vpop.permute.xlu2 %1830 }
 0x2ee   :  { %v1877_v15 = vadd.f32 %v1831_v57, %v1779_v8  ;;  %v1878_v56 = vadd.f32 %v1831_v57, %v1780_v30 }
 0x2ef   :  { %v1801_v4 = vpop.permute.xlu0 %1800 }
 0x2f0   :  { %1905 = vst [vmem:[%s3749_s6 + $0x70] sm:$0xff] %v1877_v15  ;;  %v1865_v25 = vadd.f32 %v1801_v4, %v1767_v14  ;;  %v1866_v38 = vadd.f32 %v1801_v4, %v1768_v58 }
 0x2f1   :  { %1906 = vst.msk [vmem:[%s3749_s6 + $0x78] sm:$0xff] %vm188_vm0, %v1878_v56 }
 0x2f2   :  { %1893 = vst [vmem:[%s3749_s6 + $0x10] sm:$0xff] %v1865_v25 }
 0x2f3   :  { %1894 = vst.msk [vmem:[%s3749_s6 + $0x18] sm:$0xff] %vm188_vm0, %v1866_v38 }
 0x2f9   :  { %v1811_v49 = vpop.permute.xlu1 %1810 }
 0x2fa   :  { %v1869_v10 = vadd.f32 %v1811_v49, %v1771_v35  ;;  %v1870_v60 = vadd.f32 %v1811_v49, %v1772_v23 }
 0x2fc   :  { %1897 = vst [vmem:[%s3749_s6 + $0x30] sm:$0xff] %v1869_v10 }
 0x2fd   :  { %1898 = vst.msk [vmem:[%s3749_s6 + $0x38] sm:$0xff] %vm188_vm0, %v1870_v60 }
 0x305   :  { %v1846_v46 = vpop.permute.xlu2 %1845 }
 0x306   :  { %v1883_v28 = vadd.f32 %v1846_v46, %v1785_v53  ;;  %v1884_v45 = vadd.f32 %v1846_v46, %v1786_v47 }
 0x308   :  { %1911 = vst [vmem:[%s3749_s6 + $0xa0] sm:$0xff] %v1883_v28 }
 0x309   :  { %1912 = vst.msk [vmem:[%s3749_s6 + $0xa8] sm:$0xff] %vm188_vm0, %v1884_v45 }
 0x30d   :  { %v1821_v43 = vpop.permute.xlu1 %1820 }
 0x30e   :  { %v1873_v61 = vadd.f32 %v1821_v43, %v1775_v24  ;;  %v1874_v59 = vadd.f32 %v1821_v43, %v1776_v27 }
 0x310   :  { %1901 = vst [vmem:[%s3749_s6 + $0x50] sm:$0xff] %v1873_v61 }
 0x311   :  { %1902 = vst.msk [vmem:[%s3749_s6 + $0x58] sm:$0xff] %vm188_vm0, %v1874_v59 }
 0x315   :  { %v1826_v16 = vpop.permute.xlu0 %1825 }
 0x316   :  { %v1875_v42 = vadd.f32 %v1826_v16, %v1777_v31  ;;  %v1876_v9 = vadd.f32 %v1826_v16, %v1778_v0 }
 0x318   :  { %1903 = vst [vmem:[%s3749_s6 + $0x60] sm:$0xff] %v1875_v42  ;;  %v1861_v44 = vpop.permute.xlu2 %1860 }
 0x319   :  { %1904 = vst.msk [vmem:[%s3749_s6 + $0x68] sm:$0xff] %vm188_vm0, %v1876_v9  ;;  %v1889_v7 = vadd.f32 %v1861_v44, %v1791_v18  ;;  %v1890_v6 = vadd.f32 %v1861_v44, %v1792_v37 }
 0x31b   :  { %1917 = vst [vmem:[%s3749_s6 + $0xd0] sm:$0xff] %v1889_v7 }
 0x31c   :  { %1918 = vst.msk [vmem:[%s3749_s6 + $0xd8] sm:$0xff] %vm188_vm0, %v1890_v6 }
 0x325   :  { %v1836_v11 = vpop.permute.xlu1 %1835 }
 0x326   :  { %v1879_v1 = vadd.f32 %v1836_v11, %v1781_v5  ;;  %v1880_v62 = vadd.f32 %v1836_v11, %v1782_v22 }
 0x328   :  { %1907 = vst [vmem:[%s3749_s6 + $0x80] sm:$0xff] %v1879_v1 }
 0x329   :  { %1908 = vst.msk [vmem:[%s3749_s6 + $0x88] sm:$0xff] %vm188_vm0, %v1880_v62 }
 0x32d   :  { %v1841_v12 = vpop.permute.xlu0 %1840 }
 0x32e   :  { %v1881_v54 = vadd.f32 %v1841_v12, %v1783_v36  ;;  %v1882_v29 = vadd.f32 %v1841_v12, %v1784_v2 }
 0x330   :  { %1909 = vst [vmem:[%s3749_s6 + $0x90] sm:$0xff] %v1881_v54 }
 0x331   :  { %1910 = vst.msk [vmem:[%s3749_s6 + $0x98] sm:$0xff] %vm188_vm0, %v1882_v29 }
 0x337   :  { %v1851_v17 = vpop.permute.xlu1 %1850 }
 0x338   :  { %v1885_v33 = vadd.f32 %v1851_v17, %v1787_v55  ;;  %v1886_v34 = vadd.f32 %v1851_v17, %v1788_v39 }
 0x33a   :  { %1913 = vst [vmem:[%s3749_s6 + $0xb0] sm:$0xff] %v1885_v33 }
 0x33b   :  { %1914 = vst.msk [vmem:[%s3749_s6 + $0xb8] sm:$0xff] %vm188_vm0, %v1886_v34 }
 0x33f   :  { %v1856_v8 = vpop.permute.xlu0 %1855 }
 0x340   :  { %v1887_v40 = vadd.f32 %v1856_v8, %v1789_v63  ;;  %v1888_v19 = vadd.f32 %v1856_v8, %v1790_v41 }
 0x342   :  { %1915 = vst [vmem:[%s3749_s6 + $0xc0] sm:$0xff] %v1887_v40 }
 0x343   :  { %1916 = vst.msk [vmem:[%s3749_s6 + $0xc8] sm:$0xff] %vm188_vm0, %v1888_v19 }

</bundles_post_ra>
